<compile_context>
chip_gen: v6e
topology: v6e:2x2x1
jax: 0.10.0
libtpu: 0.0.40
codegen_flags: <defaults>
</compile_context>

<pallas_src>
import math
import numpy as np

import jax
import jax.numpy as jnp
from jax import lax
from jax.experimental import pallas as pl
from jax.experimental.pallas import tpu as pltpu  # noqa: F401  (TPU backend)

# ---- model hyper-parameters (small, consistent with the module) ----
BATCH = 2
SEQ = 8          # time
D_MODEL = 32     # d_model
NUM_HEADS = 4
D_HEAD = D_MODEL // NUM_HEADS
LN_EPS = 1e-5

KPARAM_ORDER = ("ln_gb", "w_qkv", "b_qkv", "p", "quvh", "shift_masks",
                "bdmask", "wo_t", "bo")


# ----------------------------------------------------------------------------
# Pallas kernel (single invocation, whole arrays resident in VMEM)
# ----------------------------------------------------------------------------
def _attn_kernel(x_ref, ln_ref, wqkv_ref, bqkv_ref, p_ref, quvh_ref, sm_ref,
                 bd_ref, wo_ref, bo_ref, out_ref):
    T, D, H, B = SEQ, D_MODEL, NUM_HEADS, BATCH
    R = B * H * T                                   # head-tiled row count
    nbits = max(1, (T - 1).bit_length())            # bits of i = row % T

    # ---- LayerNorm over all B*T rows ----
    x = x_ref[...]                                  # (B*T, D)
    mean = jnp.mean(x, axis=-1, keepdims=True)
    var = jnp.mean(jnp.square(x - mean), axis=-1, keepdims=True)
    xn = (x - mean) * lax.rsqrt(var + LN_EPS)
    xn = xn * ln_ref[0:1, :] + ln_ref[1:2, :]

    # ---- fused Q/K/V projection (1/sqrt(d_model) pre-folded into Wq, bq) ----
    qkv = jnp.dot(xn, wqkv_ref[...],
                  preferred_element_type=jnp.float32) + bqkv_ref[...]  # (B*T, 3D)
    q = qkv[:, 0 * D:1 * D]
    k = qkv[:, 1 * D:2 * D]
    v = qkv[:, 2 * D:3 * D]

    u_m = quvh_ref[0]                               # (R, D) pre-masked, scaled u
    v_m = quvh_ref[1]                               # (R, D) pre-masked, scaled v
    hmask = quvh_ref[2]                             # (R, D) per-head lane mask

    # head-tiled queries: row b*H*T + h*T + i  <-  q[b*T + i], masked to head h
    q_tiled = jnp.concatenate(
        [q[b * T:(b + 1) * T] for b in range(B) for _ in range(H)], axis=0)
    qm = q_tiled * hmask                            # (R, D)  (masked ONCE)
    qs_u = qm + u_m
    qs_v = qm + v_m

    # ---- ONE matmul for content + positional scores (all heads, all batches) -
    left = jnp.concatenate([qs_u, qs_v], axis=0)            # (2R, D)
    kp = jnp.concatenate([k, p_ref[...]], axis=0)           # (B*T + T, D)
    res = lax.dot_general(left, kp, (((1,), (1,)), ((), ())),
                          preferred_element_type=jnp.float32)  # (2R, B*T + T)
    rc = res[0:R, 0:B * T]                # (R, B*T) content scores, all key cols
    rp = res[R:2 * R, B * T:B * T + T]    # (R, T)   scores vs. positional emb.

    # ---- Transformer-XL relative shift (shear via static lane rolls + masks) -
    #   shifted[r, j] = rp[r,   T-1+j-i]  (j <= i)       with i = r % T
    #                 = 0                 (j == i+1)
    #                 = rp[r+1, j-i-2]    (j >= i+2)
    def lroll(a, s):      # cyclic roll right by s along the length-T lane axis
        return jnp.concatenate([a[:, T - s:], a[:, :T - s]], axis=1)

    s_ = lroll(rp, 1)                                # base shift of 1 ...
    for kb in range(nbits):                          # ... plus i  ->  i + 1
        s_ = jnp.where(sm_ref[kb] > 0.5, lroll(s_, 1 << kb), s_)
    s_up = jnp.concatenate([s_[1:, :], s_[0:1, :]], axis=0)   # row r -> row r+1
    shifted = sm_ref[nbits] * s_ + sm_ref[nbits + 1] * s_up   # (R, T)

    # ---- softmax over all B*T key columns (cross-batch columns get -1e9) ----
    score = rc + jnp.concatenate([shifted] * B, axis=1) + bd_ref[...]  # (R, B*T)
    score = score - jnp.max(score, axis=-1, keepdims=True)
    e = jnp.exp(score)
    attn = e / jnp.sum(e, axis=-1, keepdims=True)    # exact softmax
    # TODO(synk): optional attention `mask` (masked_fill -1e9) not plumbed; the
    # module forward is exercised with mask=None.

    # ---- context: one matmul for all heads/batches, then head reduction ----
    ctx_st = jnp.dot(attn, v, preferred_element_type=jnp.float32) * hmask  # (R, D)
    ctx = jnp.concatenate(
        [sum(ctx_st[(b * H + h) * T:(b * H + h + 1) * T] for h in range(H))
         for b in range(B)], axis=0)                                       # (B*T, D)

    out_ref[...] = jnp.dot(ctx, wo_ref[...],
                           preferred_element_type=jnp.float32) + bo_ref[...]


# ----------------------------------------------------------------------------
# Wrapper: single pallas_call, no grid, lane-friendly 2-D (B*T, D) layout
# ----------------------------------------------------------------------------
def multi_headed_self_attention(x, kparams):
    B, T, D = x.shape
    out = pl.pallas_call(
        _attn_kernel,
        out_shape=jax.ShapeDtypeStruct((B * T, D), jnp.float32),
    )(x.reshape(B * T, D), *[kparams[name] for name in KPARAM_ORDER])
    return out.reshape(B, T, D)


# ----------------------------------------------------------------------------
# Deterministic parameter construction + one-time host-side packing
# ----------------------------------------------------------------------------
def positional_encoding(length, d_model):
    pos = jnp.arange(length, dtype=jnp.float32)[:, None]
    div = jnp.exp(jnp.arange(0, d_model, 2, dtype=jnp.float32)
                  * (-math.log(10000.0) / d_model))
    pe = jnp.zeros((length, d_model), jnp.float32)
    pe = pe.at[:, 0::2].set(jnp.sin(pos * div))
    pe = pe.at[:, 1::2].set(jnp.cos(pos * div))
    return pe


def init_params(key):
    D, H, dh = D_MODEL, NUM_HEADS, D_HEAD
    ks = jax.random.split(key, 7)

    def xavier(k, shape):  # torch Linear weight layout: (out, in)
        bound = math.sqrt(6.0 / (shape[0] + shape[1]))
        return jax.random.uniform(k, shape, jnp.float32, -bound, bound)

    wq, wk, wv, wp, wo = (xavier(ks[i], (D, D)) for i in range(5))
    u = xavier(ks[5], (H, dh))
    v = xavier(ks[6], (H, dh))
    zero_b = jnp.zeros((1, D), jnp.float32)
    return dict(
        wq_t=wq.T, bq=zero_b, wk_t=wk.T, bk=zero_b, wv_t=wv.T, bv=zero_b,
        wp_t=wp.T, wo_t=wo.T, bo=zero_b, u=u, v=v,
        gamma=jnp.ones((1, D), jnp.float32), beta=jnp.zeros((1, D), jnp.float32),
        pe=positional_encoding(SEQ, D),
    )


def pack_params(prm):
    T, D, H, dh, B = SEQ, D_MODEL, NUM_HEADS, D_HEAD, BATCH
    s = 1.0 / math.sqrt(D)                          # module uses 1/sqrt(d_model)

    w_qkv = jnp.concatenate([prm["wq_t"] * s, prm["wk_t"], prm["wv_t"]], axis=1)
    b_qkv = jnp.concatenate([prm["bq"] * s, prm["bk"], prm["bv"]], axis=1)
    ln_gb = jnp.concatenate([prm["gamma"], prm["beta"]], axis=0)
    p = prm["pe"] @ prm["wp_t"]                     # positional projection (T, D)

    u = np.asarray(prm["u"], np.float32)
    v = np.asarray(prm["v"], np.float32)
    hmask = np.zeros((H * T, D), np.float32)
    u_m = np.zeros((H * T, D), np.float32)
    v_m = np.zeros((H * T, D), np.float32)
    for h in range(H):
        hmask[h * T:(h + 1) * T, h * dh:(h + 1) * dh] = 1.0
        u_m[h * T:(h + 1) * T, h * dh:(h + 1) * dh] = u[h] * s
        v_m[h * T:(h + 1) * T, h * dh:(h + 1) * dh] = v[h] * s
    quvh = np.stack([np.tile(u_m, (B, 1)), np.tile(v_m, (B, 1)),
                     np.tile(hmask, (B, 1))])       # (3, B*H*T, D)

    R = B * H * T
    i_idx = (np.arange(R) % T)[:, None]             # query index within head blk
    j_idx = np.arange(T)[None, :]
    nbits = max(1, (T - 1).bit_length())
    bits = [np.broadcast_to(((i_idx >> kb) & 1).astype(np.float32), (R, T)).copy()
            for kb in range(nbits)]
    low = (j_idx <= i_idx).astype(np.float32)       # rel-shift lower triangle
    high = (j_idx >= i_idx + 2).astype(np.float32)  # rel-shift upper part
    shift_masks = np.stack(bits + [low, high])      # (nbits+2, R, T)

    r_b = np.arange(R)[:, None] // (H * T)
    c_b = np.arange(B * T)[None, :] // T
    bdmask = np.where(r_b == c_b, 0.0, -1e9).astype(np.float32)   # (R, B*T)

    return dict(ln_gb=ln_gb, w_qkv=w_qkv, b_qkv=b_qkv, p=p,
                quvh=jnp.asarray(quvh), shift_masks=jnp.asarray(shift_masks),
                bdmask=jnp.asarray(bdmask), wo_t=prm["wo_t"], bo=prm["bo"])


# ----------------------------------------------------------------------------
# Pure-JAX reference (mirrors the PyTorch forward, eval mode, mask=None)
# ----------------------------------------------------------------------------
def ref_forward(x, prm):
    B, T, D = x.shape
    H, dh = NUM_HEADS, D_HEAD
    pe = jnp.broadcast_to(prm["pe"][None], (B, T, D))

    mean = jnp.mean(x, -1, keepdims=True)
    var = jnp.mean((x - mean) ** 2, -1, keepdims=True)
    xn = (x - mean) / jnp.sqrt(var + LN_EPS) * prm["gamma"][0] + prm["beta"][0]

    q = (xn @ prm["wq_t"] + prm["bq"][0]).reshape(B, T, H, dh)
    k = (xn @ prm["wk_t"] + prm["bk"][0]).reshape(B, T, H, dh).transpose(0, 2, 1, 3)
    v = (xn @ prm["wv_t"] + prm["bv"][0]).reshape(B, T, H, dh).transpose(0, 2, 1, 3)
    p = (pe @ prm["wp_t"]).reshape(B, T, H, dh)

    content = jnp.einsum('bihd,bhjd->bhij', q + prm["u"], k)
    pos = jnp.einsum('bihd,bjhd->bhij', q + prm["v"], p)
    zeros = jnp.zeros((B, H, T, 1), pos.dtype)
    padded = jnp.concatenate([zeros, pos], -1).reshape(B, H, T + 1, T)
    pos = padded[:, :, 1:].reshape(B, H, T, T)

    score = (content + pos) / math.sqrt(D)
    attn = jax.nn.softmax(score, -1)
    ctx = jnp.einsum('bhij,bhjd->bihd', attn, v).reshape(B, T, D)
    return ctx @ prm["wo_t"] + prm["bo"][0]


# ----------------------------------------------------------------------------
if __name__ == "__main__":
    jax.config.update("jax_default_matmul_precision", "highest")
    key = jax.random.PRNGKey(0)
    pkey, xkey = jax.random.split(key)
    params = init_params(pkey)
    kparams = pack_params(params)
    x = jax.random.normal(xkey, (BATCH, SEQ, D_MODEL), jnp.float32)

    out = jax.block_until_ready(multi_headed_self_attention(x, kparams))
    ref = ref_forward(x, params)
    assert out.shape == (BATCH, SEQ, D_MODEL)
    if not jnp.allclose(out, ref, atol=1e-3, rtol=1e-3):
        raise AssertionError(
            f"kernel/reference mismatch, max err {jnp.max(jnp.abs(out - ref))}")
    print("KERNEL_OK")
</pallas_src>

<mosaic_0001>
module attributes {stable_mosaic.version = 11 : i64} {
  func.func @_attn_kernel(%arg0: memref<16x32xf32, #tpu.memory_space<vmem>>, %arg1: memref<2x32xf32, #tpu.memory_space<vmem>>, %arg2: memref<32x96xf32, #tpu.memory_space<vmem>>, %arg3: memref<1x96xf32, #tpu.memory_space<vmem>>, %arg4: memref<8x32xf32, #tpu.memory_space<vmem>>, %arg5: memref<3x64x32xf32, #tpu.memory_space<vmem>>, %arg6: memref<5x64x8xf32, #tpu.memory_space<vmem>>, %arg7: memref<64x16xf32, #tpu.memory_space<vmem>>, %arg8: memref<32x32xf32, #tpu.memory_space<vmem>>, %arg9: memref<1x32xf32, #tpu.memory_space<vmem>>, %arg10: memref<16x32xf32, #tpu.memory_space<vmem>>) attributes {dimension_semantics = [], scalar_prefetch = 0 : i64, scratch_operands = 0 : i64, tpu.core_type = #tpu.core_type<tc>} {
    %c0 = arith.constant 0 : index
    %c0_0 = arith.constant 0 : index
    %0 = vector.load %arg0[%c0, %c0_0] : memref<16x32xf32, #tpu.memory_space<vmem>>, vector<16x32xf32>
    %cst = arith.constant dense<0.000000e+00> : vector<16xf32>
    %1 = vector.multi_reduction <add>, %0, %cst [1] : vector<16x32xf32> to vector<16xf32>
    %2 = vector.shape_cast %1 : vector<16xf32> to vector<16x1xf32>
    %cst_1 = arith.constant 3.200000e+01 : f32
    %3 = vector.broadcast %cst_1 : f32 to vector<16x1xf32>
    %4 = arith.divf %2, %3 : vector<16x1xf32>
    %5 = vector.broadcast %4 : vector<16x1xf32> to vector<16x32xf32>
    %6 = arith.subf %0, %5 : vector<16x32xf32>
    %7 = arith.mulf %6, %6 : vector<16x32xf32>
    %cst_2 = arith.constant dense<0.000000e+00> : vector<16xf32>
    %8 = vector.multi_reduction <add>, %7, %cst_2 [1] : vector<16x32xf32> to vector<16xf32>
    %9 = vector.shape_cast %8 : vector<16xf32> to vector<16x1xf32>
    %cst_3 = arith.constant 3.200000e+01 : f32
    %10 = vector.broadcast %cst_3 : f32 to vector<16x1xf32>
    %11 = arith.divf %9, %10 : vector<16x1xf32>
    %12 = vector.broadcast %4 : vector<16x1xf32> to vector<16x32xf32>
    %13 = arith.subf %0, %12 : vector<16x32xf32>
    %cst_4 = arith.constant 9.99999974E-6 : f32
    %14 = vector.broadcast %cst_4 : f32 to vector<16x1xf32>
    %15 = arith.addf %11, %14 : vector<16x1xf32>
    %16 = math.rsqrt %15 : vector<16x1xf32>
    %17 = vector.broadcast %16 : vector<16x1xf32> to vector<16x32xf32>
    %18 = arith.mulf %13, %17 : vector<16x32xf32>
    %c0_5 = arith.constant 0 : index
    %c0_6 = arith.constant 0 : index
    %19 = vector.load %arg1[%c0_5, %c0_6] : memref<2x32xf32, #tpu.memory_space<vmem>>, vector<1x32xf32>
    %20 = vector.broadcast %19 : vector<1x32xf32> to vector<16x32xf32>
    %21 = arith.mulf %18, %20 : vector<16x32xf32>
    %c1 = arith.constant 1 : index
    %c0_7 = arith.constant 0 : index
    %22 = vector.load %arg1[%c1, %c0_7] : memref<2x32xf32, #tpu.memory_space<vmem>>, vector<1x32xf32>
    %23 = vector.broadcast %22 : vector<1x32xf32> to vector<16x32xf32>
    %24 = arith.addf %21, %23 : vector<16x32xf32>
    %c0_8 = arith.constant 0 : index
    %c0_9 = arith.constant 0 : index
    %25 = vector.load %arg2[%c0_8, %c0_9] : memref<32x96xf32, #tpu.memory_space<vmem>>, vector<32x96xf32>
    %cst_10 = arith.constant dense<0.000000e+00> : vector<16x96xf32>
    %26 = tpu.matmul %24, %25, %cst_10 {dimension_numbers = #tpu.dot_dimension_numbers<[1], [0], [0], [1], [0, 0, 1, 1], [], []>, precision = #tpu.contract_precision<fp32>} : vector<16x32xf32>, vector<32x96xf32>, vector<16x96xf32> -> vector<16x96xf32>
    %c0_11 = arith.constant 0 : index
    %c0_12 = arith.constant 0 : index
    %27 = vector.load %arg3[%c0_11, %c0_12] : memref<1x96xf32, #tpu.memory_space<vmem>>, vector<1x96xf32>
    %28 = vector.broadcast %27 : vector<1x96xf32> to vector<16x96xf32>
    %29 = arith.addf %26, %28 : vector<16x96xf32>
    %30 = vector.extract_strided_slice %29 {offsets = [0, 0], sizes = [16, 32], strides = [1, 1]} : vector<16x96xf32> to vector<16x32xf32>
    %31 = vector.extract_strided_slice %29 {offsets = [0, 32], sizes = [16, 32], strides = [1, 1]} : vector<16x96xf32> to vector<16x32xf32>
    %32 = vector.extract_strided_slice %29 {offsets = [0, 64], sizes = [16, 32], strides = [1, 1]} : vector<16x96xf32> to vector<16x32xf32>
    %c0_13 = arith.constant 0 : index
    %c0_14 = arith.constant 0 : index
    %c0_15 = arith.constant 0 : index
    %33 = vector.load %arg5[%c0_13, %c0_14, %c0_15] : memref<3x64x32xf32, #tpu.memory_space<vmem>>, vector<1x64x32xf32>
    %34 = vector.shape_cast %33 : vector<1x64x32xf32> to vector<64x32xf32>
    %c1_16 = arith.constant 1 : index
    %c0_17 = arith.constant 0 : index
    %c0_18 = arith.constant 0 : index
    %35 = vector.load %arg5[%c1_16, %c0_17, %c0_18] : memref<3x64x32xf32, #tpu.memory_space<vmem>>, vector<1x64x32xf32>
    %36 = vector.shape_cast %35 : vector<1x64x32xf32> to vector<64x32xf32>
    %c2 = arith.constant 2 : index
    %c0_19 = arith.constant 0 : index
    %c0_20 = arith.constant 0 : index
    %37 = vector.load %arg5[%c2, %c0_19, %c0_20] : memref<3x64x32xf32, #tpu.memory_space<vmem>>, vector<1x64x32xf32>
    %38 = vector.shape_cast %37 : vector<1x64x32xf32> to vector<64x32xf32>
    %39 = vector.extract_strided_slice %30 {offsets = [0, 0], sizes = [8, 32], strides = [1, 1]} : vector<16x32xf32> to vector<8x32xf32>
    %40 = vector.extract_strided_slice %30 {offsets = [0, 0], sizes = [8, 32], strides = [1, 1]} : vector<16x32xf32> to vector<8x32xf32>
    %41 = vector.extract_strided_slice %30 {offsets = [0, 0], sizes = [8, 32], strides = [1, 1]} : vector<16x32xf32> to vector<8x32xf32>
    %42 = vector.extract_strided_slice %30 {offsets = [0, 0], sizes = [8, 32], strides = [1, 1]} : vector<16x32xf32> to vector<8x32xf32>
    %43 = vector.extract_strided_slice %30 {offsets = [8, 0], sizes = [8, 32], strides = [1, 1]} : vector<16x32xf32> to vector<8x32xf32>
    %44 = vector.extract_strided_slice %30 {offsets = [8, 0], sizes = [8, 32], strides = [1, 1]} : vector<16x32xf32> to vector<8x32xf32>
    %45 = vector.extract_strided_slice %30 {offsets = [8, 0], sizes = [8, 32], strides = [1, 1]} : vector<16x32xf32> to vector<8x32xf32>
    %46 = vector.extract_strided_slice %30 {offsets = [8, 0], sizes = [8, 32], strides = [1, 1]} : vector<16x32xf32> to vector<8x32xf32>
    %47 = tpu.concatenate %39, %40, %41, %42, %43, %44, %45, %46 in 0 : vector<8x32xf32>, vector<8x32xf32>, vector<8x32xf32>, vector<8x32xf32>, vector<8x32xf32>, vector<8x32xf32>, vector<8x32xf32>, vector<8x32xf32> -> vector<64x32xf32>
    %48 = arith.mulf %47, %38 : vector<64x32xf32>
    %49 = arith.addf %48, %34 : vector<64x32xf32>
    %50 = arith.addf %48, %36 : vector<64x32xf32>
    %51 = tpu.concatenate %49, %50 in 0 : vector<64x32xf32>, vector<64x32xf32> -> vector<128x32xf32>
    %c0_21 = arith.constant 0 : index
    %c0_22 = arith.constant 0 : index
    %52 = vector.load %arg4[%c0_21, %c0_22] : memref<8x32xf32, #tpu.memory_space<vmem>>, vector<8x32xf32>
    %53 = tpu.concatenate %31, %52 in 0 : vector<16x32xf32>, vector<8x32xf32> -> vector<24x32xf32>
    %cst_23 = arith.constant dense<0.000000e+00> : vector<128x24xf32>
    %54 = tpu.matmul %51, %53, %cst_23 {dimension_numbers = #tpu.dot_dimension_numbers<[1], [1], [0], [0], [0, 0, 1, 0], [], []>, precision = #tpu.contract_precision<fp32>} : vector<128x32xf32>, vector<24x32xf32>, vector<128x24xf32> -> vector<128x24xf32>
    %55 = vector.extract_strided_slice %54 {offsets = [0, 0], sizes = [64, 16], strides = [1, 1]} : vector<128x24xf32> to vector<64x16xf32>
    %56 = vector.extract_strided_slice %54 {offsets = [64, 16], sizes = [64, 8], strides = [1, 1]} : vector<128x24xf32> to vector<64x8xf32>
    %57 = vector.extract_strided_slice %56 {offsets = [0, 7], sizes = [64, 1], strides = [1, 1]} : vector<64x8xf32> to vector<64x1xf32>
    %58 = vector.extract_strided_slice %56 {offsets = [0, 0], sizes = [64, 7], strides = [1, 1]} : vector<64x8xf32> to vector<64x7xf32>
    %59 = tpu.concatenate %57, %58 in 1 : vector<64x1xf32>, vector<64x7xf32> -> vector<64x8xf32>
    %c0_24 = arith.constant 0 : index
    %c0_25 = arith.constant 0 : index
    %c0_26 = arith.constant 0 : index
    %60 = vector.load %arg6[%c0_24, %c0_25, %c0_26] : memref<5x64x8xf32, #tpu.memory_space<vmem>>, vector<1x64x8xf32>
    %61 = vector.shape_cast %60 : vector<1x64x8xf32> to vector<64x8xf32>
    %cst_27 = arith.constant 5.000000e-01 : f32
    %62 = vector.broadcast %cst_27 : f32 to vector<64x8xf32>
    %63 = arith.cmpf ogt, %61, %62 : vector<64x8xf32>
    %64 = vector.extract_strided_slice %59 {offsets = [0, 7], sizes = [64, 1], strides = [1, 1]} : vector<64x8xf32> to vector<64x1xf32>
    %65 = vector.extract_strided_slice %59 {offsets = [0, 0], sizes = [64, 7], strides = [1, 1]} : vector<64x8xf32> to vector<64x7xf32>
    %66 = tpu.concatenate %64, %65 in 1 : vector<64x1xf32>, vector<64x7xf32> -> vector<64x8xf32>
    %67 = arith.select %63, %66, %59 : vector<64x8xi1>, vector<64x8xf32>
    %c1_28 = arith.constant 1 : index
    %c0_29 = arith.constant 0 : index
    %c0_30 = arith.constant 0 : index
    %68 = vector.load %arg6[%c1_28, %c0_29, %c0_30] : memref<5x64x8xf32, #tpu.memory_space<vmem>>, vector<1x64x8xf32>
    %69 = vector.shape_cast %68 : vector<1x64x8xf32> to vector<64x8xf32>
    %cst_31 = arith.constant 5.000000e-01 : f32
    %70 = vector.broadcast %cst_31 : f32 to vector<64x8xf32>
    %71 = arith.cmpf ogt, %69, %70 : vector<64x8xf32>
    %72 = vector.extract_strided_slice %67 {offsets = [0, 6], sizes = [64, 2], strides = [1, 1]} : vector<64x8xf32> to vector<64x2xf32>
    %73 = vector.extract_strided_slice %67 {offsets = [0, 0], sizes = [64, 6], strides = [1, 1]} : vector<64x8xf32> to vector<64x6xf32>
    %74 = tpu.concatenate %72, %73 in 1 : vector<64x2xf32>, vector<64x6xf32> -> vector<64x8xf32>
    %75 = arith.select %71, %74, %67 : vector<64x8xi1>, vector<64x8xf32>
    %c2_32 = arith.constant 2 : index
    %c0_33 = arith.constant 0 : index
    %c0_34 = arith.constant 0 : index
    %76 = vector.load %arg6[%c2_32, %c0_33, %c0_34] : memref<5x64x8xf32, #tpu.memory_space<vmem>>, vector<1x64x8xf32>
    %77 = vector.shape_cast %76 : vector<1x64x8xf32> to vector<64x8xf32>
    %cst_35 = arith.constant 5.000000e-01 : f32
    %78 = vector.broadcast %cst_35 : f32 to vector<64x8xf32>
    %79 = arith.cmpf ogt, %77, %78 : vector<64x8xf32>
    %80 = vector.extract_strided_slice %75 {offsets = [0, 4], sizes = [64, 4], strides = [1, 1]} : vector<64x8xf32> to vector<64x4xf32>
    %81 = vector.extract_strided_slice %75 {offsets = [0, 0], sizes = [64, 4], strides = [1, 1]} : vector<64x8xf32> to vector<64x4xf32>
    %82 = tpu.concatenate %80, %81 in 1 : vector<64x4xf32>, vector<64x4xf32> -> vector<64x8xf32>
    %83 = arith.select %79, %82, %75 : vector<64x8xi1>, vector<64x8xf32>
    %84 = vector.extract_strided_slice %83 {offsets = [1, 0], sizes = [63, 8], strides = [1, 1]} : vector<64x8xf32> to vector<63x8xf32>
    %85 = vector.extract_strided_slice %83 {offsets = [0, 0], sizes = [1, 8], strides = [1, 1]} : vector<64x8xf32> to vector<1x8xf32>
    %86 = tpu.concatenate %84, %85 in 0 : vector<63x8xf32>, vector<1x8xf32> -> vector<64x8xf32>
    %c3 = arith.constant 3 : index
    %c0_36 = arith.constant 0 : index
    %c0_37 = arith.constant 0 : index
    %87 = vector.load %arg6[%c3, %c0_36, %c0_37] : memref<5x64x8xf32, #tpu.memory_space<vmem>>, vector<1x64x8xf32>
    %88 = vector.shape_cast %87 : vector<1x64x8xf32> to vector<64x8xf32>
    %89 = arith.mulf %88, %83 : vector<64x8xf32>
    %c4 = arith.constant 4 : index
    %c0_38 = arith.constant 0 : index
    %c0_39 = arith.constant 0 : index
    %90 = vector.load %arg6[%c4, %c0_38, %c0_39] : memref<5x64x8xf32, #tpu.memory_space<vmem>>, vector<1x64x8xf32>
    %91 = vector.shape_cast %90 : vector<1x64x8xf32> to vector<64x8xf32>
    %92 = arith.mulf %91, %86 : vector<64x8xf32>
    %93 = arith.addf %89, %92 : vector<64x8xf32>
    %94 = tpu.concatenate %93, %93 in 1 : vector<64x8xf32>, vector<64x8xf32> -> vector<64x16xf32>
    %95 = arith.addf %55, %94 : vector<64x16xf32>
    %c0_40 = arith.constant 0 : index
    %c0_41 = arith.constant 0 : index
    %96 = vector.load %arg7[%c0_40, %c0_41] : memref<64x16xf32, #tpu.memory_space<vmem>>, vector<64x16xf32>
    %97 = arith.addf %95, %96 : vector<64x16xf32>
    %cst_42 = arith.constant dense<0xFF800000> : vector<64xf32>
    %98 = vector.multi_reduction <maximumf>, %97, %cst_42 [1] : vector<64x16xf32> to vector<64xf32>
    %99 = vector.shape_cast %98 : vector<64xf32> to vector<64x1xf32>
    %100 = vector.broadcast %99 : vector<64x1xf32> to vector<64x16xf32>
    %101 = arith.subf %97, %100 : vector<64x16xf32>
    %102 = math.exp %101 : vector<64x16xf32>
    %cst_43 = arith.constant dense<0.000000e+00> : vector<64xf32>
    %103 = vector.multi_reduction <add>, %102, %cst_43 [1] : vector<64x16xf32> to vector<64xf32>
    %104 = vector.shape_cast %103 : vector<64xf32> to vector<64x1xf32>
    %105 = vector.broadcast %104 : vector<64x1xf32> to vector<64x16xf32>
    %106 = arith.divf %102, %105 : vector<64x16xf32>
    %cst_44 = arith.constant dense<0.000000e+00> : vector<64x32xf32>
    %107 = tpu.matmul %106, %32, %cst_44 {dimension_numbers = #tpu.dot_dimension_numbers<[1], [0], [0], [1], [0, 0, 1, 1], [], []>, precision = #tpu.contract_precision<fp32>} : vector<64x16xf32>, vector<16x32xf32>, vector<64x32xf32> -> vector<64x32xf32>
    %108 = arith.mulf %107, %38 : vector<64x32xf32>
    %109 = vector.extract_strided_slice %108 {offsets = [0, 0], sizes = [8, 32], strides = [1, 1]} : vector<64x32xf32> to vector<8x32xf32>
    %cst_45 = arith.constant 0.000000e+00 : f32
    %110 = vector.broadcast %cst_45 : f32 to vector<8x32xf32>
    %111 = arith.addf %110, %109 : vector<8x32xf32>
    %112 = vector.extract_strided_slice %108 {offsets = [8, 0], sizes = [8, 32], strides = [1, 1]} : vector<64x32xf32> to vector<8x32xf32>
    %113 = arith.addf %111, %112 : vector<8x32xf32>
    %114 = vector.extract_strided_slice %108 {offsets = [16, 0], sizes = [8, 32], strides = [1, 1]} : vector<64x32xf32> to vector<8x32xf32>
    %115 = arith.addf %113, %114 : vector<8x32xf32>
    %116 = vector.extract_strided_slice %108 {offsets = [24, 0], sizes = [8, 32], strides = [1, 1]} : vector<64x32xf32> to vector<8x32xf32>
    %117 = arith.addf %115, %116 : vector<8x32xf32>
    %118 = vector.extract_strided_slice %108 {offsets = [32, 0], sizes = [8, 32], strides = [1, 1]} : vector<64x32xf32> to vector<8x32xf32>
    %cst_46 = arith.constant 0.000000e+00 : f32
    %119 = vector.broadcast %cst_46 : f32 to vector<8x32xf32>
    %120 = arith.addf %119, %118 : vector<8x32xf32>
    %121 = vector.extract_strided_slice %108 {offsets = [40, 0], sizes = [8, 32], strides = [1, 1]} : vector<64x32xf32> to vector<8x32xf32>
    %122 = arith.addf %120, %121 : vector<8x32xf32>
    %123 = vector.extract_strided_slice %108 {offsets = [48, 0], sizes = [8, 32], strides = [1, 1]} : vector<64x32xf32> to vector<8x32xf32>
    %124 = arith.addf %122, %123 : vector<8x32xf32>
    %125 = vector.extract_strided_slice %108 {offsets = [56, 0], sizes = [8, 32], strides = [1, 1]} : vector<64x32xf32> to vector<8x32xf32>
    %126 = arith.addf %124, %125 : vector<8x32xf32>
    %127 = tpu.concatenate %117, %126 in 0 : vector<8x32xf32>, vector<8x32xf32> -> vector<16x32xf32>
    %c0_47 = arith.constant 0 : index
    %c0_48 = arith.constant 0 : index
    %128 = vector.load %arg8[%c0_47, %c0_48] : memref<32x32xf32, #tpu.memory_space<vmem>>, vector<32x32xf32>
    %cst_49 = arith.constant dense<0.000000e+00> : vector<16x32xf32>
    %129 = tpu.matmul %127, %128, %cst_49 {dimension_numbers = #tpu.dot_dimension_numbers<[1], [0], [0], [1], [0, 0, 1, 1], [], []>, precision = #tpu.contract_precision<fp32>} : vector<16x32xf32>, vector<32x32xf32>, vector<16x32xf32> -> vector<16x32xf32>
    %c0_50 = arith.constant 0 : index
    %c0_51 = arith.constant 0 : index
    %130 = vector.load %arg9[%c0_50, %c0_51] : memref<1x32xf32, #tpu.memory_space<vmem>>, vector<1x32xf32>
    %131 = vector.broadcast %130 : vector<1x32xf32> to vector<16x32xf32>
    %132 = arith.addf %129, %131 : vector<16x32xf32>
    %c0_52 = arith.constant 0 : index
    %c0_53 = arith.constant 0 : index
    %133 = vector.load %arg10[%c0_52, %c0_53] : memref<16x32xf32, #tpu.memory_space<vmem>>, vector<16x32xf32>
    tpu.vector_store %arg10[%c0_52, %c0_53], %132 {strides = array<i32>} : memref<16x32xf32, #tpu.memory_space<vmem>>, vector<16x32xf32>,
    return
  }
}

</mosaic_0001>

<bundles_post_ra>
// kernel: tpu_custom_call.1
= control target key start
LH: loop header
LB: loop body
LE: loop exit
PB: predicated region body
PF: predicated region fallthrough
CT: control target
= control target key end

     0   :  { %vm38_vm0 = vcmask 261120   ;;  %s5938_s0 = inlined_call_operand.vmem [shape: f32[16,32], index: 0, kind: input, shape index: {}]   ;;  %s5939_s1 = inlined_call_operand.vmem [shape: f32[2,32], index: 1, kind: input, shape index: {}]   ;;  %s5940_s2 = inlined_call_operand.vmem [shape: f32[32,96], index: 2, kind: input, shape index: {}]   ;;  %s5941_s3 = inlined_call_operand.vmem [shape: f32[1,96], index: 3, kind: input, shape index: {}]   ;;  %s5942_s4 = inlined_call_operand.vmem [shape: f32[8,32], index: 4, kind: input, shape index: {}]   ;;  %s5943_s5 = inlined_call_operand.vmem [shape: f32[3,64,32], index: 5, kind: input, shape index: {}]   ;;  %s5944_s6 = inlined_call_operand.vmem [shape: f32[5,64,8], index: 6, kind: input, shape index: {}]   ;;  %s5945_s7 = inlined_call_operand.vmem [shape: f32[64,16], index: 7, kind: input, shape index: {}]   ;;  %s5946_s8 = inlined_call_operand.vmem [shape: f32[32,32], index: 8, kind: input, shape index: {}]   ;;  %s5947_s9 = inlined_call_operand.vmem [shape: f32[1,32], index: 9, kind: input, shape index: {}]   ;;  %s5948_s10 = inlined_call_operand.hbm [shape: f32[16,32], index: 10, kind: output, shape index: {}]  }
   0x1   :  { %v36_v0 = vld [vmem:[%s5938_s0] sm:$0xff]  ;;  %v37_v1 = vld [vmem:[%s5938_s0 + $0x8] sm:$0xff] }
   0x2   :  { %15 = vsyncpa [#allocation3], 0  ;;  %v39_v2 = vsel %vm38_vm0, %v36_v0, 0.0  ;;  %v42_v3 = vsel %vm38_vm0, %v37_v1, 0.0  ;;  %v83_v14 = vld [vmem:[%s5940_s2 + $0x18] sm:$0xff]  ;;  %v82_v15 = vld [vmem:[%s5940_s2 + $0x10] sm:$0xff] }
   0x3   :  { %40 = vadd.xlane.f32.xlu0 %v39_v2  ;;  %v81_v16 = vld [vmem:[%s5940_s2 + $0x8] sm:$0xff]  ;;  %v4672_v17 = vand.u32 4294901760, %v83_v14  ;;  %v4674_v18 = vand.u32 4294901760, %v82_v15  ;;  %v80_v31 = vld [vmem:[%s5940_s2] sm:$0xff]  ;;  %s4576_s25 = smov 32   ;;  %s4579_s30 = smov 113  }
   0x4   :  { %v4676_v19 = vand.u32 4294901760, %v81_v16  ;;  %v4711_v32 = vand.u32 4294901760, %v80_v31  ;;  %v675_v38 = vld [vmem:[%s5942_s4] sm:$0xff]  ;;  %s4578_s4 = smov 105   ;;  %vm1914_vm1 = vcmask 7168   ;;  %s4581_s11 = smov 1  }
   0x5   :  { %v4679_v20 = vsub.f32 %v83_v14, %v4672_v17  ;;  %v4682_v21 = vsub.f32 %v82_v15, %v4674_v18  ;;  %4088 = vmatprep.subr.mxu0 %v4672_v17  ;;  %v3790_v46 = vld [vmem:[%s5939_s1] ss:$0 sm:$0xff]  ;;  %v3791_v48 = vld [vmem:[%s5939_s1 + $0x1] ss:$0 sm:$0xff]  ;;  %s4577_s1 = smov 96   ;;  %s4582_s16 = smov 122  }
   0x6   :  { %v4685_v22 = vsub.f32 %v81_v16, %v4676_v19  ;;  %4089 = vmatpush3.msra.mxu0 %v4672_v17  ;;  %v4714_v34 = vsub.f32 %v80_v31, %v4711_v32  ;;  %s4583_s18 = smov 2   ;;  %vm2084_vm10 = vcmask 15360   ;;  %s4585_s12 = smov 4  }
   0x7   :  { %43 = vadd.xlane.f32.xlu0 %v42_v3  ;;  %v4690_v23 = vand.u32 4294901760, %v4679_v20  ;;  %v4693_v24 = vand.u32 4294901760, %v4682_v21  ;;  %4090 = vmatprep.subr.mxu0 %v4674_v18 }
   0x8   :  { %v4696_v25 = vand.u32 4294901760, %v4685_v22  ;;  %4091 = vmatpush3.msra.mxu0 %v4674_v18  ;;  %v4719_v35 = vand.u32 4294901760, %v4714_v34 }
   0x9   :  { %v214_v26 = vsub.f32 %v4679_v20, %v4690_v23  ;;  %v221_v27 = vsub.f32 %v4682_v21, %v4693_v24  ;;  %4092 = vmatprep.subr.mxu0 %v4676_v19 }
   0xa   :  { %v228_v28 = vsub.f32 %v4685_v22, %v4696_v25  ;;  %4093 = vmatpush3.msra.mxu0 %v4676_v19  ;;  %v235_v36 = vsub.f32 %v4714_v34, %v4719_v35 }
   0xb   :  { %v215_v29 = vand.u32 4294901760, %v214_v26  ;;  %v222_v30 = vand.u32 4294901760, %v221_v27  ;;  %4094 = vmatprep.subr.mxu0 %v4711_v32 }
   0xc   :  { %v229_v33 = vand.u32 4294901760, %v228_v28  ;;  %4095 = vmatpush3.msra.mxu0 %v4711_v32  ;;  %v236_v37 = vand.u32 4294901760, %v235_v36 }
   0xd   :  { %4099 = vmatprep.subr.mxu1 %v215_v29  ;;  %4110 = vmatprep.subr.mxu0 %v4679_v20 }
   0xe   :  { %4100 = vmatpush3.msra.mxu1 %v215_v29 }
   0xf   :  { %4101 = vmatprep.subr.mxu1 %v222_v30 }
  0x10   :  { %4102 = vmatpush3.msra.mxu1 %v222_v30 }
  0x11   :  { %4103 = vmatprep.subr.mxu1 %v229_v33 }
  0x12   :  { %4104 = vmatpush3.msra.mxu1 %v229_v33 }
  0x13   :  { %4105 = vmatprep.subr.mxu1 %v236_v37 }
  0x14   :  { %4106 = vmatpush3.msra.mxu1 %v236_v37  ;;  %v625_v37 = vld [vmem:[%s5943_s5] sm:$0xff] }
  0x15   :  { %4121 = vmatprep.subr.mxu1 %v4672_v17 }
  0x1d   :  { %677 = vrot.lane.b32.xlu0 %v675_v38, %s4576_s25 }
  0x8c   :  { %v41_v4 = vpop.xlane.xlu0 %40 }
  0x8d   :  { %v46_v5 = vmul.f32 0.03125, %v41_v4 }
  0x8f   :  { %v4653_v6 = vsub.f32 %v36_v0, %v46_v5 }
  0x90   :  { %v44_v7 = vpop.xlane.xlu0 %43 }
  0x91   :  { %v47_v8 = vmul.f32 0.03125, %v44_v7  ;;  %v50_v9 = vmul.f32 %v4653_v6, %v4653_v6 }
  0x93   :  { %v4657_v10 = vsub.f32 %v37_v1, %v47_v8  ;;  %v52_v11 = vsel %vm38_vm0, %v50_v9, 0.0  ;;  %v3792_v9 = vld [vmem:[%s5941_s3] ss:$0 sm:$0xff]  ;;  %s4580_s3 = smov 121  }
  0x94   :  { %53 = vadd.xlane.f32.xlu1 %v52_v11  ;;  %v678_v3 = vpop.permute.xlu0 %677 }
  0x95   :  { %v51_v12 = vmul.f32 %v4657_v10, %v4657_v10 }
  0x97   :  { %v55_v13 = vsel %vm38_vm0, %v51_v12, 0.0 }
  0x98   :  { %56 = vadd.xlane.f32.xlu1 %v55_v13 }
  0xa9   :  { %685 = vrot.lane.b32.xlu1 %v678_v3, %s4577_s1 }
 0x11d   :  { %v54_v39 = vpop.xlane.xlu1 %53 }
 0x11e   :  { %v58_v40 = vmul.f32 0.03125, %v54_v39 }
 0x120   :  { %v60_v41 = vadd.f32 1e-05, %v58_v40 }
 0x121   :  { %v57_v42 = vpop.xlane.xlu1 %56 }
 0x122   :  { %4510 = vrsqrt.f32 %v60_v41  ;;  %v59_v43 = vmul.f32 0.03125, %v57_v42 }
 0x124   :  { %v61_v44 = vadd.f32 1e-05, %v59_v43 }
 0x125   :  { %v686_v4 = vpop.permute.xlu1 %685 }
 0x126   :  { %4512 = vrsqrt.f32 %v61_v44  ;;  %v739_v5 = vsel %vm38_vm0, %v686_v4, 0 }
 0x12f   :  { %v4511_v45 = vpop.eup %4510 }
 0x130   :  { %v64_v47 = vmul.f32 %v4511_v45, %v4653_v6  ;;  %v4770_v6 = vand.u32 4294901760, %v739_v5 }
 0x132   :  { %v71_v49 = vmul.f32 %v3790_v46, %v64_v47  ;;  %v4773_v8 = vsub.f32 %v739_v5, %v4770_v6  ;;  %v3803_v47 = vld [vmem:[%s5943_s5 + $0x90] sm:$0xff] }
 0x133   :  { %v4513_v50 = vpop.eup %4512  ;;  %v631_v5 = vld [vmem:[%s5943_s5 + $0x30] sm:$0xff] }
 0x134   :  { %v78_v51 = vadd.f32 %v3791_v48, %v71_v49  ;;  %v65_v52 = vmul.f32 %v4513_v50, %v4657_v10  ;;  %v4781_v12 = vand.u32 4294901760, %v4773_v8  ;;  %v626_v49 = vld [vmem:[%s5943_s5 + $0x8] sm:$0xff] }
 0x136   :  { %v92_v53 = vsel %vm38_vm0, %v78_v51, 0  ;;  %v72_v54 = vmul.f32 %v3790_v46, %v65_v52  ;;  %v999_v14 = vsub.f32 %v4773_v8, %v4781_v12  ;;  %v3802_v46 = vld [vmem:[%s5943_s5 + $0x88] sm:$0xff]  ;;  %v3804_v51 = vld [vmem:[%s5943_s5 + $0x98] sm:$0xff]  ;;  %v3805_v52 = vld [vmem:[%s5943_s5 + $0xa0] sm:$0xff] }
 0x137   :  { %v166_v55 = vand.u32 4294901760, %v92_v53 }
 0x138   :  { %v79_v56 = vadd.f32 %v3791_v48, %v72_v54  ;;  %v3806_v54 = vld [vmem:[%s5943_s5 + $0xa8] sm:$0xff] }
 0x139   :  { %4107 = vmatprep.mubr.f32.mxu1 %v166_v55  ;;  %v167_v57 = vsub.f32 %v92_v53, %v166_v55  ;;  %v627_v53 = vld [vmem:[%s5943_s5 + $0x10] sm:$0xff] }
 0x13a   :  { %v95_v58 = vsel %vm38_vm0, %v79_v56, 0 }
 0x13b   :  { %v176_v59 = vand.u32 4294901760, %v95_v58  ;;  %v168_v60 = vand.u32 4294901760, %v167_v57 }
 0x13d   :  { %v177_v61 = vsub.f32 %v95_v58, %v176_v59  ;;  %4108 = vmatmul.mubr.f32.vlgmr.msra.gmra.mxu1 %v176_v59  ;;  %v169_v62 = vsub.f32 %v167_v57, %v168_v60  ;;  %v3807_v58 = vld [vmem:[%s5943_s5 + $0xb0] sm:$0xff] }
 0x13e   :  { %4122 = vmatpush3.msra.mxu1 %v4672_v17  ;;  %4129 = vmatprep.mubr.f32.mxu1 %v168_v60  ;;  %v628_v60 = vld [vmem:[%s5943_s5 + $0x18] sm:$0xff] }
 0x13f   :  { %4123 = vmatprep.subr.mxu1 %v4674_v18  ;;  %v170_v63 = vand.u32 4294901760, %v169_v62  ;;  %v178_v0 = vand.u32 4294901760, %v177_v61 }
 0x140   :  { %4124 = vmatpush3.msra.mxu1 %v4674_v18 }
 0x141   :  { %4125 = vmatprep.subr.mxu1 %v4676_v19  ;;  %4096 = vmatprep.mubr.f32.mxu0 %v170_v63  ;;  %v179_v1 = vsub.f32 %v177_v61, %v178_v0  ;;  %v3808_v63 = vld [vmem:[%s5943_s5 + $0xb8] sm:$0xff] }
 0x142   :  { %4126 = vmatpush3.msra.mxu1 %v4676_v19 }
 0x143   :  { %4127 = vmatprep.subr.mxu1 %v4711_v32  ;;  %v180_v2 = vand.u32 4294901760, %v179_v1 }
 0x144   :  { %4128 = vmatpush3.msra.mxu1 %v4711_v32 }
 0x145   :  { %4130 = vmatmul.mubr.f32.vlgmr.msra.gmra.mxu1 %v178_v0  ;;  %4143 = vmatprep.subr.mxu1 %v4672_v17  ;;  %v630_v0 = vld [vmem:[%s5943_s5 + $0x28] sm:$0xff] }
 0x146   :  { %4097 = vmatmul.mubr.f32.vlgmr.msra.gmra.mxu0 %v180_v2  ;;  %4144 = vmatpush3.msra.mxu1 %v4672_v17 }
 0x147   :  { %4111 = vmatpush3.msra.mxu0 %v4679_v20  ;;  %4151 = vmatprep.mubr.f32.mxu1 %v166_v55 }
 0x148   :  { %4112 = vmatprep.subr.mxu0 %v4682_v21  ;;  %4118 = vmatprep.mubr.f32.mxu0 %v167_v57 }
 0x149   :  { %4145 = vmatprep.subr.mxu1 %v4674_v18  ;;  %4113 = vmatpush3.msra.mxu0 %v4682_v21 }
 0x14a   :  { %4146 = vmatpush3.msra.mxu1 %v4674_v18  ;;  %4114 = vmatprep.subr.mxu0 %v4685_v22  ;;  %v1000_v18 = vand.u32 4294901760, %v999_v14 }
 0x14b   :  { %4147 = vmatprep.subr.mxu1 %v4676_v19  ;;  %4115 = vmatpush3.msra.mxu0 %v4685_v22 }
 0x14c   :  { %4148 = vmatpush3.msra.mxu1 %v4676_v19  ;;  %4116 = vmatprep.subr.mxu0 %v4714_v34 }
 0x14d   :  { %4149 = vmatprep.subr.mxu1 %v4711_v32  ;;  %4117 = vmatpush3.msra.mxu0 %v4714_v34 }
 0x14e   :  { %4150 = vmatpush3.msra.mxu1 %v4711_v32  ;;  %4119 = vmatmul.mubr.f32.vlgmr.msra.gmra.mxu0 %v177_v61  ;;  %v629_v61 = vld [vmem:[%s5943_s5 + $0x20] sm:$0xff] }
 0x14f   :  { %4132 = vmatprep.subr.mxu0 %v4690_v23  ;;  %4152 = vmatmul.mubr.f32.vlgmr.msra.gmra.mxu1 %v176_v59 }
 0x150   :  { %4133 = vmatpush3.msra.mxu0 %v4690_v23  ;;  %4140 = vmatprep.mubr.f32.mxu0 %v166_v55 }
 0x151   :  { %4134 = vmatprep.subr.mxu0 %v4693_v24  ;;  %4184 = vmatprep.subr.mxu1 %v1000_v18 }
 0x152   :  { %4135 = vmatpush3.msra.mxu0 %v4693_v24  ;;  %4185 = vmatpush3.xpose.msra.mxu1 %v1000_v18 }
 0x153   :  { %4136 = vmatprep.subr.mxu0 %v4696_v25 }
 0x154   :  { %4137 = vmatpush3.msra.mxu0 %v4696_v25 }
 0x155   :  { %4138 = vmatprep.subr.mxu0 %v4719_v35 }
 0x156   :  { %4139 = vmatpush3.msra.mxu0 %v4719_v35  ;;  %v3801_v35 = vld [vmem:[%s5943_s5 + $0x80] sm:$0xff] }
 0x157   :  { %4141 = vmatmul.mubr.f32.vlgmr.msra.gmra.mxu0 %v176_v59  ;;  %4154 = vmatprep.subr.mxu0 %v4770_v6 }
 0x158   :  { %4155 = vmatpush3.xpose.msra.mxu0 %v4770_v6 }
 0x1fd   :  { %v4109_v10 = vpop.f32.mrf.mxu1 }
 0x1ff   :  { %v273_v17 = vpop.f32.mrf.mxu1 }
 0x205   :  { %v4131_v20 = vpop.f32.mrf.mxu1 }
 0x206   :  { %v4098_v7 = vpop.f32.mrf.mxu0 }
 0x207   :  { %v183_v13 = vadd.f32 %v4098_v7, %v3792_v9  ;;  %v443_v25 = vpop.f32.mrf.mxu1 }
 0x208   :  { %v172_v11 = vpop.f32.mrf.mxu0 }
 0x209   :  { %v173_v15 = vadd.f32 %v3792_v9, %v172_v11  ;;  %v280_v19 = vadd.f32 %v4109_v10, %v183_v13  ;;  %v632_v11 = vld [vmem:[%s5943_s5 + $0x38] sm:$0xff] }
 0x20b   :  { %v274_v23 = vadd.f32 %v273_v17, %v173_v15 }
 0x20e   :  { %v4120_v16 = vpop.f32.mrf.mxu0 }
 0x20f   :  { %v367_v22 = vadd.f32 %v4120_v16, %v280_v19  ;;  %v4153_v27 = vpop.f32.mrf.mxu1 }
 0x210   :  { %v359_v21 = vpop.f32.mrf.mxu0 }
 0x211   :  { %v360_v24 = vadd.f32 %v359_v21, %v274_v23  ;;  %v452_v26 = vadd.f32 %v4131_v20, %v367_v22  ;;  %v615_v34 = vpop.f32.mrf.mxu1 }
 0x213   :  { %v444_v30 = vadd.f32 %v443_v25, %v360_v24  ;;  %v3793_v24 = vld [vmem:[%s5943_s5 + $0x40] sm:$0xff] }
 0x217   :  { %v4142_v28 = vpop.f32.mrf.mxu0 }
 0x218   :  { %v541_v29 = vadd.f32 %v4142_v28, %v452_v26 }
 0x219   :  { %v534_v31 = vpop.f32.mrf.mxu0 }
 0x21a   :  { %v4785_v32 = vadd.f32 %v4153_v27, %v541_v29  ;;  %v535_v33 = vadd.f32 %v534_v31, %v444_v30  ;;  %v3794_v31 = vld [vmem:[%s5943_s5 + $0x48] sm:$0xff] }
 0x21c   :  { %v4790_v36 = vadd.f32 %v615_v34, %v535_v33  ;;  %683 = vrot.lane.b32.xlu1 %v4785_v32, %s4577_s1  ;;  %v4838_v57 = vmul.f32 %v3805_v52, %v4785_v32  ;;  %v4850_v62 = vmul.f32 %v3806_v54, %v4785_v32  ;;  %v4859_v1 = vmul.f32 %v3807_v58, %v4785_v32  ;;  %v3796_v54 = vld [vmem:[%s5943_s5 + $0x58] sm:$0xff] }
 0x21d   :  { %v4869_v9 = vmul.f32 %v3808_v63, %v4785_v32 }
 0x21e   :  { %v651_v38 = vmul.f32 %v3801_v35, %v4790_v36  ;;  %v652_v48 = vmul.f32 %v3802_v46, %v4790_v36  ;;  %v653_v50 = vmul.f32 %v3803_v47, %v4790_v36  ;;  %v4835_v56 = vmul.f32 %v3804_v51, %v4790_v36 }
 0x21f   :  { %v663_v4 = vadd.f32 %v4838_v57, %v629_v61  ;;  %v664_v10 = vadd.f32 %v4850_v62, %v630_v0  ;;  %v665_v14 = vadd.f32 %v4859_v1, %v631_v5  ;;  %v666_v18 = vadd.f32 %v4869_v9, %v632_v11 }
 0x220   :  { %681 = vrot.lane.b32.xlu1 %v4790_v36, %s4577_s1  ;;  %v659_v39 = vadd.f32 %v651_v38, %v625_v37  ;;  %v660_v55 = vadd.f32 %v652_v48, %v626_v49  ;;  %v661_v59 = vadd.f32 %v653_v50, %v627_v53  ;;  %v662_v3 = vadd.f32 %v4835_v56, %v628_v60 }
 0x221   :  { %v700_v17 = vsel %vm38_vm0, %v663_v4, 0  ;;  %v703_v19 = vsel %vm38_vm0, %v664_v10, 0  ;;  %v706_v23 = vsel %vm38_vm0, %v665_v14, 0  ;;  %v709_v27 = vsel %vm38_vm0, %v666_v18, 0 }
 0x222   :  { %v688_v40 = vsel %vm38_vm0, %v659_v39, 0  ;;  %v691_v2 = vsel %vm38_vm0, %v660_v55, 0  ;;  %v694_v7 = vsel %vm38_vm0, %v661_v59, 0  ;;  %v697_v16 = vsel %vm38_vm0, %v662_v3, 0  ;;  %v3795_v39 = vld [vmem:[%s5943_s5 + $0x50] sm:$0xff] }
 0x223   :  { %v4801_v41 = vand.u32 4294901760, %v688_v40  ;;  %v4875_v13 = vand.u32 4294901760, %v691_v2  ;;  %v4878_v15 = vand.u32 4294901760, %v694_v7  ;;  %v4887_v21 = vand.u32 4294901760, %v697_v16 }
 0x224   :  { %v4889_v22 = vand.u32 4294901760, %v700_v17  ;;  %v4898_v26 = vand.u32 4294901760, %v703_v19  ;;  %v4901_v29 = vand.u32 4294901760, %v706_v23  ;;  %v667_v30 = vadd.f32 %v3793_v24, %v651_v38 }
 0x225   :  { %4190 = vmatprep.mubr.f32.mxu1 %v4801_v41  ;;  %v4805_v42 = vsub.f32 %v688_v40, %v4801_v41  ;;  %v4885_v20 = vsub.f32 %v691_v2, %v4875_v13  ;;  %v4896_v25 = vsub.f32 %v694_v7, %v4878_v15  ;;  %v4909_v35 = vsub.f32 %v697_v16, %v4887_v21  ;;  %v3798_v16 = vld [vmem:[%s5943_s5 + $0x68] sm:$0xff] }
 0x226   :  { %v4912_v37 = vsub.f32 %v700_v17, %v4889_v22  ;;  %v668_v46 = vadd.f32 %v3794_v31, %v652_v48  ;;  %v4930_v51 = vsub.f32 %v706_v23, %v4901_v29  ;;  %v712_v52 = vsel %vm38_vm0, %v667_v30, 0 }
 0x227   :  { %v811_v43 = vand.u32 4294901760, %v4805_v42  ;;  %v821_v34 = vand.u32 4294901760, %v4885_v20  ;;  %v831_v38 = vand.u32 4294901760, %v4896_v25  ;;  %v669_v53 = vadd.f32 %v3795_v39, %v653_v50  ;;  %v3797_v50 = vld [vmem:[%s5943_s5 + $0x60] sm:$0xff] }
 0x228   :  { %v841_v58 = vand.u32 4294901760, %v4909_v35  ;;  %v851_v59 = vand.u32 4294901760, %v4912_v37  ;;  %v4958_v3 = vand.u32 4294901760, %v712_v52  ;;  %v715_v4 = vsel %vm38_vm0, %v668_v46, 0  ;;  %v3800_v46 = vld [vmem:[%s5943_s5 + $0x78] sm:$0xff] }
 0x229   :  { %v812_v44 = vsub.f32 %v4805_v42, %v811_v43  ;;  %v822_v48 = vsub.f32 %v4885_v20, %v821_v34  ;;  %v832_v63 = vsub.f32 %v4896_v25, %v831_v38  ;;  %v670_v5 = vadd.f32 %v3796_v54, %v4835_v56 }
 0x22a   :  { %v718_v11 = vsel %vm38_vm0, %v669_v53, 0  ;;  %v671_v14 = vadd.f32 %v3797_v50, %v4838_v57  ;;  %v842_v56 = vsub.f32 %v4909_v35, %v841_v58  ;;  %v852_v18 = vsub.f32 %v4912_v37, %v851_v59  ;;  %v3799_v57 = vld [vmem:[%s5943_s5 + $0x70] sm:$0xff] }
 0x22b   :  { %v813_v45 = vand.u32 4294901760, %v812_v44  ;;  %v4920_v44 = vand.u32 4294901760, %v709_v27  ;;  %v823_v17 = vand.u32 4294901760, %v822_v48  ;;  %v833_v24 = vand.u32 4294901760, %v832_v63 }
 0x22c   :  { %v4991_v30 = vsub.f32 %v712_v52, %v4958_v3  ;;  %v4993_v31 = vand.u32 4294901760, %v718_v11  ;;  %v672_v39 = vadd.f32 %v3798_v16, %v4850_v62  ;;  %v724_v52 = vsel %vm38_vm0, %v671_v14, 0 }
 0x22d   :  { %4160 = vmatprep.mubr.f32.mxu0 %v813_v45  ;;  %v4923_v45 = vsub.f32 %v703_v19, %v4898_v26  ;;  %v4955_v0 = vsub.f32 %v709_v27, %v4920_v44  ;;  %v871_v19 = vand.u32 4294901760, %v4930_v51  ;;  %v673_v54 = vadd.f32 %v3799_v57, %v4859_v1 }
 0x22e   :  { %v853_v48 = vand.u32 4294901760, %v852_v18  ;;  %v674_v1 = vadd.f32 %v3800_v46, %v4869_v9  ;;  %v891_v14 = vand.u32 4294901760, %v4991_v30  ;;  %v5021_v16 = vsub.f32 %v718_v11, %v4993_v31 }
 0x22f   :  { %v861_v2 = vand.u32 4294901760, %v4923_v45  ;;  %v881_v53 = vand.u32 4294901760, %v4955_v0  ;;  %v872_v50 = vsub.f32 %v4930_v51, %v871_v19 }
 0x230   :  { %v911_v46 = vand.u32 4294901760, %v5021_v16 }
 0x231   :  { %v862_v62 = vsub.f32 %v4923_v45, %v861_v2  ;;  %v873_v18 = vand.u32 4294901760, %v872_v50  ;;  %v882_v9 = vsub.f32 %v4955_v0, %v881_v53 }
 0x28e   :  { %v684_v28 = vpop.permute.xlu1 %683 }
 0x28f   :  { %v737_v33 = vsel %vm38_vm0, %v684_v28, 0  ;;  %v4988_v28 = vand.u32 4294901760, %v715_v4 }
 0x290   :  { %v4917_v40 = vand.u32 4294901760, %v737_v33 }
 0x292   :  { %v4926_v47 = vsub.f32 %v737_v33, %v4917_v40  ;;  %4156 = vmatprep.subr.mxu0 %v4917_v40  ;;  %v682_v49 = vpop.permute.xlu1 %681  ;;  %v721_v33 = vsel %vm38_vm0, %v670_v5, 0  ;;  %v5013_v5 = vsub.f32 %v715_v4, %v4988_v28  ;;  %v863_v4 = vand.u32 4294901760, %v862_v62 }
 0x293   :  { %v735_v55 = vsel %vm38_vm0, %v682_v49, 0  ;;  %4157 = vmatpush3.xpose.msra.mxu0 %v4917_v40 }
 0x294   :  { %v4946_v60 = vand.u32 4294901760, %v735_v55  ;;  %v4949_v61 = vand.u32 4294901760, %v4926_v47  ;;  %v901_v11 = vand.u32 4294901760, %v5013_v5 }
 0x296   :  { %v4963_v7 = vsub.f32 %v735_v55, %v4946_v60  ;;  %4158 = vmatprep.subr.mxu0 %v4946_v60  ;;  %v1006_v10 = vsub.f32 %v4926_v47, %v4949_v61  ;;  %v843_v55 = vand.u32 4294901760, %v842_v56  ;;  %v727_v56 = vsel %vm38_vm0, %v672_v39, 0 }
 0x297   :  { %4159 = vmatpush3.xpose.msra.mxu0 %v4946_v60  ;;  %v892_v39 = vsub.f32 %v4991_v30, %v891_v14 }
 0x298   :  { %4214 = vmatprep.subr.mxu0 %v4773_v8  ;;  %v1007_v23 = vand.u32 4294901760, %v1006_v10  ;;  %v4986_v27 = vand.u32 4294901760, %v4963_v7  ;;  %v5015_v10 = vand.u32 4294901760, %v721_v33 }
 0x299   :  { %v893_v62 = vand.u32 4294901760, %v892_v39 }
 0x29a   :  { %4161 = vmatmul.mubr.f32.vlgmr.msra.gmra.mxu0 %v823_v17  ;;  %4186 = vmatprep.subr.mxu1 %v1007_v23  ;;  %v1013_v49 = vsub.f32 %v4963_v7, %v4986_v27  ;;  %v5023_v17 = vand.u32 4294901760, %v724_v52  ;;  %v5034_v57 = vsub.f32 %v721_v33, %v5015_v10  ;;  %v883_v33 = vand.u32 4294901760, %v882_v9 }
 0x29b   :  { %4163 = vmatprep.mubr.f32.mxu0 %v833_v24  ;;  %4187 = vmatpush3.xpose.msra.mxu1 %v1007_v23  ;;  %v5036_v23 = vand.u32 4294901760, %v727_v56  ;;  %v733_v24 = vsel %vm38_vm0, %v674_v1, 0 }
 0x29c   :  { %4215 = vmatpush3.xpose.msra.mxu0 %v4773_v8  ;;  %v1014_v63 = vand.u32 4294901760, %v1013_v49  ;;  %v730_v8 = vsel %vm38_vm0, %v673_v54, 0  ;;  %v902_v54 = vsub.f32 %v5013_v5, %v901_v11 }
 0x29d   :  { %4216 = vmatprep.subr.mxu0 %v4926_v47  ;;  %v5047_v49 = vand.u32 4294901760, %v730_v8 }
 0x29e   :  { %4164 = vmatmul.mubr.f32.gmra.mxu0 %v843_v55  ;;  %4188 = vmatprep.subr.mxu1 %v1014_v63  ;;  %v5058_v55 = vsub.f32 %v727_v56, %v5036_v23  ;;  %v903_v1 = vand.u32 4294901760, %v902_v54 }
 0x29f   :  { %4166 = vmatprep.mubr.f32.mxu0 %v853_v48  ;;  %4189 = vmatpush3.xpose.msra.mxu1 %v1014_v63  ;;  %v5060_v48 = vand.u32 4294901760, %v733_v24  ;;  %v5069_v63 = vsub.f32 %v730_v8, %v5047_v49 }
 0x2a0   :  { %4217 = vmatpush3.xpose.msra.mxu0 %v4926_v47  ;;  %4244 = vmatprep.subr.mxu1 %v4770_v6  ;;  %v5045_v47 = vsub.f32 %v724_v52, %v5023_v17  ;;  %v921_v52 = vand.u32 4294901760, %v5034_v57 }
 0x2a1   :  { %4218 = vmatprep.subr.mxu0 %v4963_v7  ;;  %v951_v39 = vand.u32 4294901760, %v5069_v63 }
 0x2a2   :  { %4167 = vmatmul.mubr.f32.gmra.mxu0 %v863_v4  ;;  %4191 = vmatmul.mubr.f32.vlgmr.msra.gmra.mxu1 %v4875_v13  ;;  %v931_v50 = vand.u32 4294901760, %v5045_v47  ;;  %v922_v56 = vsub.f32 %v5034_v57, %v921_v52  ;;  %v941_v4 = vand.u32 4294901760, %v5058_v55 }
 0x2a3   :  { %4169 = vmatprep.mubr.f32.mxu0 %v873_v18  ;;  %4193 = vmatprep.mubr.f32.mxu1 %v4878_v15  ;;  %v5079_v18 = vsub.f32 %v733_v24, %v5060_v48 }
 0x2a4   :  { %4219 = vmatpush3.xpose.msra.mxu0 %v4963_v7  ;;  %4245 = vmatpush3.xpose.msra.mxu1 %v4770_v6  ;;  %v912_v7 = vsub.f32 %v5021_v16, %v911_v46  ;;  %v932_v9 = vsub.f32 %v5045_v47, %v931_v50  ;;  %v942_v24 = vsub.f32 %v5058_v55, %v941_v4 }
 0x2a5   :  { %4246 = vmatprep.subr.mxu1 %v4917_v40  ;;  %4274 = vmatprep.subr.mxu0 %v4781_v12  ;;  %v961_v54 = vand.u32 4294901760, %v5079_v18 }
 0x2a6   :  { %4170 = vmatmul.mubr.f32.gmra.mxu0 %v883_v33  ;;  %4194 = vmatmul.mubr.f32.gmra.mxu1 %v4887_v21  ;;  %v913_v8 = vand.u32 4294901760, %v912_v7  ;;  %v923_v33 = vand.u32 4294901760, %v922_v56  ;;  %v952_v7 = vsub.f32 %v5069_v63, %v951_v39 }
 0x2a7   :  { %4172 = vmatprep.mubr.f32.mxu0 %v893_v62  ;;  %4196 = vmatprep.mubr.f32.mxu1 %v4889_v22  ;;  %v933_v62 = vand.u32 4294901760, %v932_v9  ;;  %v962_v56 = vsub.f32 %v5079_v18, %v961_v54 }
 0x2a8   :  { %4247 = vmatpush3.xpose.msra.mxu1 %v4917_v40 }
 0x2a9   :  { %4248 = vmatprep.subr.mxu1 %v4946_v60  ;;  %v963_v9 = vand.u32 4294901760, %v962_v56 }
 0x2aa   :  { %4173 = vmatmul.mubr.f32.gmra.mxu0 %v903_v1  ;;  %4197 = vmatmul.mubr.f32.gmra.mxu1 %v4898_v26  ;;  %v943_v1 = vand.u32 4294901760, %v942_v24 }
 0x2ab   :  { %4175 = vmatprep.mubr.f32.mxu0 %v913_v8  ;;  %4199 = vmatprep.mubr.f32.mxu1 %v4901_v29  ;;  %v953_v8 = vand.u32 4294901760, %v952_v7 }
 0x2ac   :  { %4249 = vmatpush3.xpose.msra.mxu1 %v4946_v60 }
 0x2ad   :  { %4304 = vmatprep.subr.mxu1 %v4770_v6 }
 0x2ae   :  { %4176 = vmatmul.mubr.f32.gmra.mxu0 %v923_v33  ;;  %4200 = vmatmul.mubr.f32.gmra.mxu1 %v4920_v44 }
 0x2af   :  { %4178 = vmatprep.mubr.f32.mxu0 %v933_v62  ;;  %4202 = vmatprep.mubr.f32.mxu1 %v4958_v3 }
 0x2b2   :  { %4179 = vmatmul.mubr.f32.gmra.mxu0 %v943_v1  ;;  %4203 = vmatmul.mubr.f32.gmra.mxu1 %v4988_v28 }
 0x2b3   :  { %4181 = vmatprep.mubr.f32.mxu0 %v953_v8  ;;  %4205 = vmatprep.mubr.f32.mxu1 %v4993_v31 }
 0x2b6   :  { %4182 = vmatmul.mubr.f32.gmra.mxu0 %v963_v9  ;;  %4206 = vmatmul.mubr.f32.gmra.mxu1 %v5015_v10 }
 0x2b7   :  { %4208 = vmatprep.mubr.f32.mxu1 %v5023_v17  ;;  %4220 = vmatprep.mubr.f32.mxu0 %v4805_v42 }
 0x2ba   :  { %4209 = vmatmul.mubr.f32.gmra.mxu1 %v5036_v23  ;;  %4221 = vmatmul.mubr.f32.vlgmr.msra.gmra.mxu0 %v4885_v20 }
 0x2bb   :  { %4275 = vmatpush3.xpose.msra.mxu0 %v4781_v12  ;;  %4211 = vmatprep.mubr.f32.mxu1 %v5047_v49 }
 0x2bc   :  { %4223 = vmatprep.mubr.f32.mxu0 %v4896_v25  ;;  %4276 = vmatprep.subr.mxu0 %v4949_v61 }
 0x2be   :  { %4212 = vmatmul.mubr.f32.gmra.mxu1 %v5060_v48  ;;  %4224 = vmatmul.mubr.f32.gmra.mxu0 %v4909_v35 }
 0x2bf   :  { %4277 = vmatpush3.xpose.msra.mxu0 %v4949_v61  ;;  %4226 = vmatprep.mubr.f32.mxu0 %v4912_v37 }
 0x2c0   :  { %4250 = vmatprep.mubr.f32.mxu1 %v811_v43  ;;  %4278 = vmatprep.subr.mxu0 %v4986_v27 }
 0x2c2   :  { %4227 = vmatmul.mubr.f32.gmra.mxu0 %v4923_v45  ;;  %4251 = vmatmul.mubr.f32.vlgmr.msra.gmra.mxu1 %v821_v34 }
 0x2c3   :  { %4279 = vmatpush3.xpose.msra.mxu0 %v4986_v27  ;;  %4305 = vmatpush3.xpose.msra.mxu1 %v4770_v6 }
 0x2c4   :  { %4229 = vmatprep.mubr.f32.mxu0 %v4930_v51  ;;  %4253 = vmatprep.mubr.f32.mxu1 %v831_v38 }
 0x2c5   :  { %4306 = vmatprep.subr.mxu1 %v4917_v40 }
 0x2c6   :  { %4230 = vmatmul.mubr.f32.gmra.mxu0 %v4955_v0  ;;  %4254 = vmatmul.mubr.f32.gmra.mxu1 %v841_v58 }
 0x2c7   :  { %4307 = vmatpush3.xpose.msra.mxu1 %v4917_v40  ;;  %4232 = vmatprep.mubr.f32.mxu0 %v4991_v30 }
 0x2c8   :  { %4256 = vmatprep.mubr.f32.mxu1 %v851_v59  ;;  %4308 = vmatprep.subr.mxu1 %v4946_v60 }
 0x2ca   :  { %4233 = vmatmul.mubr.f32.gmra.mxu0 %v5013_v5  ;;  %4257 = vmatmul.mubr.f32.gmra.mxu1 %v861_v2 }
 0x2cb   :  { %4309 = vmatpush3.xpose.msra.mxu1 %v4946_v60  ;;  %4235 = vmatprep.mubr.f32.mxu0 %v5021_v16 }
 0x2cc   :  { %4259 = vmatprep.mubr.f32.mxu1 %v871_v19 }
 0x2ce   :  { %4236 = vmatmul.mubr.f32.gmra.mxu0 %v5034_v57  ;;  %4260 = vmatmul.mubr.f32.gmra.mxu1 %v881_v53 }
 0x2cf   :  { %4238 = vmatprep.mubr.f32.mxu0 %v5045_v47  ;;  %4262 = vmatprep.mubr.f32.mxu1 %v891_v14 }
 0x2d2   :  { %4239 = vmatmul.mubr.f32.gmra.mxu0 %v5058_v55  ;;  %4263 = vmatmul.mubr.f32.gmra.mxu1 %v901_v11 }
 0x2d3   :  { %4241 = vmatprep.mubr.f32.mxu0 %v5069_v63  ;;  %4265 = vmatprep.mubr.f32.mxu1 %v911_v46 }
 0x2d6   :  { %4242 = vmatmul.mubr.f32.gmra.mxu0 %v5079_v18  ;;  %4266 = vmatmul.mubr.f32.gmra.mxu1 %v921_v52 }
 0x2d7   :  { %4268 = vmatprep.mubr.f32.mxu1 %v931_v50  ;;  %4280 = vmatprep.mubr.f32.mxu0 %v4801_v41 }
 0x2da   :  { %4269 = vmatmul.mubr.f32.gmra.mxu1 %v941_v4  ;;  %4281 = vmatmul.mubr.f32.vlgmr.msra.gmra.mxu0 %v4875_v13 }
 0x2db   :  { %4271 = vmatprep.mubr.f32.mxu1 %v951_v39  ;;  %4283 = vmatprep.mubr.f32.mxu0 %v4878_v15 }
 0x2de   :  { %4272 = vmatmul.mubr.f32.gmra.mxu1 %v961_v54  ;;  %4284 = vmatmul.mubr.f32.gmra.mxu0 %v4887_v21 }
 0x2df   :  { %4286 = vmatprep.mubr.f32.mxu0 %v4889_v22  ;;  %4310 = vmatprep.mubr.f32.mxu1 %v4801_v41 }
 0x2e2   :  { %4287 = vmatmul.mubr.f32.gmra.mxu0 %v4898_v26  ;;  %4311 = vmatmul.mubr.f32.vlgmr.msra.gmra.mxu1 %v4875_v13 }
 0x2e3   :  { %4289 = vmatprep.mubr.f32.mxu0 %v4901_v29  ;;  %4313 = vmatprep.mubr.f32.mxu1 %v4878_v15 }
 0x2e6   :  { %4290 = vmatmul.mubr.f32.gmra.mxu0 %v4920_v44  ;;  %4314 = vmatmul.mubr.f32.gmra.mxu1 %v4887_v21 }
 0x2e7   :  { %4292 = vmatprep.mubr.f32.mxu0 %v4958_v3  ;;  %4316 = vmatprep.mubr.f32.mxu1 %v4889_v22 }
 0x2ea   :  { %4293 = vmatmul.mubr.f32.gmra.mxu0 %v4988_v28  ;;  %4317 = vmatmul.mubr.f32.gmra.mxu1 %v4898_v26 }
 0x2eb   :  { %4295 = vmatprep.mubr.f32.mxu0 %v4993_v31  ;;  %4319 = vmatprep.mubr.f32.mxu1 %v4901_v29 }
 0x2ee   :  { %4296 = vmatmul.mubr.f32.gmra.mxu0 %v5015_v10  ;;  %4320 = vmatmul.mubr.f32.gmra.mxu1 %v4920_v44 }
 0x2ef   :  { %4298 = vmatprep.mubr.f32.mxu0 %v5023_v17  ;;  %4322 = vmatprep.mubr.f32.mxu1 %v4958_v3 }
 0x2f2   :  { %4299 = vmatmul.mubr.f32.gmra.mxu0 %v5036_v23  ;;  %4323 = vmatmul.mubr.f32.gmra.mxu1 %v4988_v28 }
 0x2f3   :  { %4301 = vmatprep.mubr.f32.mxu0 %v5047_v49  ;;  %4325 = vmatprep.mubr.f32.mxu1 %v4993_v31 }
 0x2f6   :  { %4302 = vmatmul.mubr.f32.gmra.mxu0 %v5060_v48  ;;  %4326 = vmatmul.mubr.f32.gmra.mxu1 %v5015_v10 }
 0x2f7   :  { %4328 = vmatprep.mubr.f32.mxu1 %v5023_v17 }
 0x2fa   :  { %4329 = vmatmul.mubr.f32.gmra.mxu1 %v5036_v23 }
 0x2fb   :  { %4331 = vmatprep.mubr.f32.mxu1 %v5047_v49 }
 0x2fe   :  { %4332 = vmatmul.mubr.f32.gmra.mxu1 %v5060_v48 }
 0x35a   :  { %v4162_v6 = vpop.f32.mrf.mxu0 }
 0x35c   :  { %v815_v12 = vpop.f32.mrf.mxu0 }
 0x35e   :  { %v4165_v41 = vpop.f32.mrf.mxu0 }
 0x360   :  { %v835_v42 = vpop.f32.mrf.mxu0 }
 0x362   :  { %v4168_v43 = vpop.f32.mrf.mxu0  ;;  %v4192_v13 = vpop.f32.mrf.mxu1 }
 0x363   :  { %v1058_v15 = vadd.f32 %v4192_v13, %v4162_v6 }
 0x364   :  { %v855_v20 = vpop.f32.mrf.mxu0  ;;  %v1051_v21 = vpop.f32.mrf.mxu1 }
 0x365   :  { %v1052_v22 = vadd.f32 %v1051_v21, %v815_v12 }
 0x366   :  { %v4171_v25 = vpop.f32.mrf.mxu0  ;;  %v4195_v26 = vpop.f32.mrf.mxu1 }
 0x367   :  { %v1070_v29 = vadd.f32 %v4195_v26, %v4165_v41 }
 0x368   :  { %v875_v34 = vpop.f32.mrf.mxu0  ;;  %v1063_v35 = vpop.f32.mrf.mxu1 }
 0x369   :  { %v1064_v37 = vadd.f32 %v1063_v35, %v835_v42 }
 0x36a   :  { %v5199_v40 = vpop.f32.mrf.mxu0  ;;  %v4198_v38 = vpop.f32.mrf.mxu1 }
 0x36b   :  { %v1082_v44 = vadd.f32 %v4198_v38, %v4168_v43 }
 0x36c   :  { %v5201_v45 = vpop.f32.mrf.mxu0  ;;  %v1075_v51 = vpop.f32.mrf.mxu1 }
 0x36d   :  { %v1076_v58 = vadd.f32 %v1075_v51, %v855_v20 }
 0x36e   :  { %v5203_v59 = vpop.f32.mrf.mxu0  ;;  %v4201_v60 = vpop.f32.mrf.mxu1 }
 0x36f   :  { %v1094_v61 = vadd.f32 %v4201_v60, %v4171_v25 }
 0x370   :  { %v5205_v0 = vpop.f32.mrf.mxu0  ;;  %v1087_v2 = vpop.f32.mrf.mxu1 }
 0x371   :  { %v1088_v3 = vadd.f32 %v1087_v2, %v875_v34 }
 0x372   :  { %v4180_v19 = vpop.f32.mrf.mxu0  ;;  %v5207_v27 = vpop.f32.mrf.mxu1 }
 0x374   :  { %v935_v28 = vpop.f32.mrf.mxu0  ;;  %v5209_v30 = vpop.f32.mrf.mxu1 }
 0x376   :  { %v4183_v31 = vpop.f32.mrf.mxu0  ;;  %v5211_v53 = vpop.f32.mrf.mxu1 }
 0x378   :  { %v955_v5 = vpop.f32.mrf.mxu0  ;;  %v5213_v10 = vpop.f32.mrf.mxu1 }
 0x37a   :  { %v4210_v14 = vpop.f32.mrf.mxu1  ;;  %v4222_v16 = vpop.f32.mrf.mxu0 }
 0x37b   :  { %v5215_v17 = vadd.f32 %v4210_v14, %v4180_v19  ;;  %v1227_v11 = vadd.f32 %v4222_v16, %v1058_v15 }
 0x37c   :  { %v1123_v57 = vpop.f32.mrf.mxu1  ;;  %v1219_v23 = vpop.f32.mrf.mxu0 }
 0x37d   :  { %v5217_v46 = vadd.f32 %v1123_v57, %v935_v28  ;;  %v1220_v47 = vadd.f32 %v1219_v23, %v1052_v22 }
 0x37e   :  { %v4213_v49 = vpop.f32.mrf.mxu1  ;;  %v4225_v52 = vpop.f32.mrf.mxu0 }
 0x37f   :  { %v5219_v55 = vadd.f32 %v4213_v49, %v4183_v31  ;;  %v1241_v48 = vadd.f32 %v4225_v52, %v1070_v29 }
 0x380   :  { %v1135_v50 = vpop.f32.mrf.mxu1  ;;  %v1233_v63 = vpop.f32.mrf.mxu0 }
 0x381   :  { %v5221_v4 = vadd.f32 %v1135_v50, %v955_v5  ;;  %v1234_v18 = vadd.f32 %v1233_v63, %v1064_v37 }
 0x382   :  { %v4228_v39 = vpop.f32.mrf.mxu0  ;;  %v4252_v33 = vpop.f32.mrf.mxu1 }
 0x383   :  { %v1255_v24 = vadd.f32 %v4228_v39, %v1082_v44  ;;  %v1409_v54 = vadd.f32 %v4252_v33, %v1227_v11 }
 0x384   :  { %v1247_v62 = vpop.f32.mrf.mxu0  ;;  %v1400_v7 = vpop.f32.mrf.mxu1 }
 0x385   :  { %v1248_v1 = vadd.f32 %v1247_v62, %v1076_v58  ;;  %v1401_v56 = vadd.f32 %v1400_v7, %v1220_v47 }
 0x386   :  { %v4231_v8 = vpop.f32.mrf.mxu0  ;;  %v4255_v9 = vpop.f32.mrf.mxu1 }
 0x387   :  { %v1269_v6 = vadd.f32 %v4231_v8, %v1094_v61  ;;  %v1425_v12 = vadd.f32 %v4255_v9, %v1241_v48 }
 0x388   :  { %v1261_v41 = vpop.f32.mrf.mxu0  ;;  %v1416_v42 = vpop.f32.mrf.mxu1 }
 0x389   :  { %v1262_v43 = vadd.f32 %v1261_v41, %v1088_v3  ;;  %v1417_v13 = vadd.f32 %v1416_v42, %v1234_v18 }
 0x38a   :  { %v4234_v15 = vpop.f32.mrf.mxu0  ;;  %v4258_v20 = vpop.f32.mrf.mxu1 }
 0x38b   :  { %v1441_v21 = vadd.f32 %v4258_v20, %v1255_v24  ;;  %v1106_v20 = vadd.f32 %v5207_v27, %v5199_v40 }
 0x38c   :  { %v1275_v22 = vpop.f32.mrf.mxu0  ;;  %v1432_v25 = vpop.f32.mrf.mxu1 }
 0x38d   :  { %v1433_v26 = vadd.f32 %v1432_v25, %v1248_v1 }
 0x38e   :  { %v5223_v29 = vpop.f32.mrf.mxu0  ;;  %v4261_v34 = vpop.f32.mrf.mxu1 }
 0x38f   :  { %v1457_v35 = vadd.f32 %v4261_v34, %v1269_v6  ;;  %v1283_v34 = vadd.f32 %v4234_v15, %v1106_v20 }
 0x390   :  { %v5225_v37 = vpop.f32.mrf.mxu0  ;;  %v1448_v38 = vpop.f32.mrf.mxu1 }
 0x391   :  { %v1449_v44 = vadd.f32 %v1448_v38, %v1262_v43 }
 0x392   :  { %v5227_v51 = vpop.f32.mrf.mxu0  ;;  %v4264_v58 = vpop.f32.mrf.mxu1 }
 0x394   :  { %v5229_v60 = vpop.f32.mrf.mxu0  ;;  %v1464_v61 = vpop.f32.mrf.mxu1 }
 0x396   :  { %v5231_v2 = vpop.f32.mrf.mxu0  ;;  %v4267_v3 = vpop.f32.mrf.mxu1 }
 0x398   :  { %v5233_v19 = vpop.f32.mrf.mxu0  ;;  %v5235_v28 = vpop.f32.mrf.mxu1 }
 0x39a   :  { %v5237_v31 = vpop.f32.mrf.mxu1  ;;  %v4282_v5 = vpop.f32.mrf.mxu0 }
 0x39b   :  { %v1607_v14 = vadd.f32 %v4282_v5, %v1409_v54 }
 0x39c   :  { %v5239_v16 = vpop.f32.mrf.mxu1  ;;  %v1600_v11 = vpop.f32.mrf.mxu0 }
 0x39d   :  { %v1601_v57 = vadd.f32 %v1600_v11, %v1401_v56 }
 0x39e   :  { %v5241_v23 = vpop.f32.mrf.mxu1  ;;  %v4285_v47 = vpop.f32.mrf.mxu0 }
 0x39f   :  { %v1619_v49 = vadd.f32 %v4285_v47, %v1425_v12 }
 0x3a0   :  { %v5243_v52 = vpop.f32.mrf.mxu1  ;;  %v1612_v48 = vpop.f32.mrf.mxu0 }
 0x3a1   :  { %v1613_v50 = vadd.f32 %v1612_v48, %v1417_v13 }
 0x3a2   :  { %v4288_v63 = vpop.f32.mrf.mxu0  ;;  %v4312_v18 = vpop.f32.mrf.mxu1 }
 0x3a3   :  { %v1631_v39 = vadd.f32 %v4288_v63, %v1441_v21  ;;  %v5245_v33 = vadd.f32 %v4312_v18, %v1607_v14 }
 0x3a4   :  { %v1624_v24 = vpop.f32.mrf.mxu0  ;;  %v1764_v62 = vpop.f32.mrf.mxu1 }
 0x3a5   :  { %v1625_v54 = vadd.f32 %v1624_v24, %v1433_v26  ;;  %v5247_v7 = vadd.f32 %v1764_v62, %v1601_v57  ;;  %v1100_v26 = vadd.f32 %v5209_v30, %v5201_v45 }
 0x3a6   :  { %v4291_v1 = vpop.f32.mrf.mxu0  ;;  %v4315_v56 = vpop.f32.mrf.mxu1 }
 0x3a7   :  { %v1643_v8 = vadd.f32 %v4291_v1, %v1457_v35  ;;  %v5249_v9 = vadd.f32 %v4315_v56, %v1619_v49  ;;  %v1276_v14 = vadd.f32 %v1275_v22, %v1100_v26 }
 0x3a8   :  { %v1636_v6 = vpop.f32.mrf.mxu0  ;;  %v1776_v12 = vpop.f32.mrf.mxu1 }
 0x3a9   :  { %v1637_v41 = vadd.f32 %v1636_v6, %v1449_v44  ;;  %v5251_v42 = vadd.f32 %v1776_v12, %v1613_v50  ;;  %v1473_v44 = vadd.f32 %v4264_v58, %v1283_v34  ;;  %v1465_v47 = vadd.f32 %v1464_v61, %v1276_v14 }
 0x3aa   :  { %v4294_v43 = vpop.f32.mrf.mxu0  ;;  %v4318_v13 = vpop.f32.mrf.mxu1  ;;  %v1118_v50 = vadd.f32 %v5211_v53, %v5203_v59  ;;  %v1112_v61 = vadd.f32 %v5213_v10, %v5205_v0  ;;  %v1311_v0 = vadd.f32 %v5227_v51, %v5215_v17 }
 0x3ab   :  { %v5255_v21 = vadd.f32 %v4318_v13, %v1631_v39  ;;  %v1655_v49 = vadd.f32 %v4294_v43, %v1473_v44 }
 0x3ac   :  { %v1788_v25 = vpop.f32.mrf.mxu1  ;;  %v1648_v38 = vpop.f32.mrf.mxu0  ;;  %v1297_v63 = vadd.f32 %v5223_v29, %v1118_v50  ;;  %v1290_v59 = vadd.f32 %v5225_v37, %v1112_v61  ;;  %v1505_v37 = vadd.f32 %v5237_v31, %v1311_v0  ;;  %v1318_v31 = vadd.f32 %v5233_v19, %v5221_v4 }
 0x3ad   :  { %v5259_v35 = vadd.f32 %v1788_v25, %v1625_v54  ;;  %v1649_v45 = vadd.f32 %v1648_v38, %v1465_v47 }
 0x3ae   :  { %v4321_v5 = vpop.f32.mrf.mxu1  ;;  %v4297_v40 = vpop.f32.mrf.mxu0  ;;  %v1489_v39 = vadd.f32 %v4267_v3, %v1297_v63  ;;  %v1481_v62 = vadd.f32 %v5235_v28, %v1290_v59  ;;  %v1304_v28 = vadd.f32 %v5229_v60, %v5217_v46  ;;  %v1513_v20 = vadd.f32 %v5243_v52, %v1318_v31 }
 0x3af   :  { %v5261_v11 = vadd.f32 %v4321_v5, %v1643_v8 }
 0x3b0   :  { %v1800_v57 = vpop.f32.mrf.mxu1  ;;  %v1660_v22 = vpop.f32.mrf.mxu0  ;;  %v1667_v53 = vadd.f32 %v4297_v40, %v1489_v39 }
 0x3b1   :  { %v5263_v48 = vadd.f32 %v1800_v57, %v1637_v41  ;;  %v1661_v10 = vadd.f32 %v1660_v22, %v1481_v62  ;;  %v1497_v41 = vadd.f32 %v5239_v16, %v1304_v28  ;;  %v1325_v16 = vadd.f32 %v5231_v2, %v5219_v55  ;;  %v1923_v62 = vld [vmem:[%s5944_s6] sm:$0xff] }
 0x3b2   :  { %v4324_v27 = vpop.f32.mrf.mxu1  ;;  %v4300_v29 = vpop.f32.mrf.mxu0  ;;  %vm1931_vm3 = vcmp.gt.f32.partialorder %v1923_v62, 0.5 }
 0x3b3   :  { %v1819_v30 = vadd.f32 %v4324_v27, %v1655_v49  ;;  %v1679_v6 = vadd.f32 %v4300_v29, %v1505_v37  ;;  %v1521_v26 = vadd.f32 %v5241_v23, %v1325_v16 }
 0x3b4   :  { %v1812_v15 = vpop.f32.mrf.mxu1  ;;  %v1672_v3 = vpop.f32.mrf.mxu0 }
 0x3b5   :  { %v1813_v18 = vadd.f32 %v1812_v15, %v1649_v45  ;;  %1868 = vrot.lane.b32.xlu1 %v1819_v30, %s4578_s4  ;;  %v1673_v43 = vadd.f32 %v1672_v3, %v1497_v41  ;;  %v1925_v41 = vld [vmem:[%s5944_s6 + $0x10] sm:$0xff] }
 0x3b6   :  { %v4327_v58 = vpop.f32.mrf.mxu1  ;;  %v4303_v12 = vpop.f32.mrf.mxu0  ;;  %vm1933_vm5 = vcmp.gt.f32.partialorder %v1925_v41, 0.5 }
 0x3b7   :  { %1866 = vrot.lane.b32.xlu0 %v1813_v18, %s4578_s4  ;;  %v1831_v54 = vadd.f32 %v4327_v58, %v1667_v53  ;;  %v1691_v4 = vadd.f32 %v4303_v12, %v1521_v26  ;;  %v1924_v53 = vld [vmem:[%s5944_s6 + $0x8] sm:$0xff] }
 0x3b8   :  { %v1824_v24 = vpop.f32.mrf.mxu1  ;;  %v1684_v13 = vpop.f32.mrf.mxu0  ;;  %vm1932_vm2 = vcmp.gt.f32.partialorder %v1924_v53, 0.5  ;;  %v3811_v53 = vld [vmem:[%s5944_s6 + $0x50] sm:$0xff] }
 0x3b9   :  { %1892 = vrot.lane.b32.xlu1 %v1819_v30, %s4579_s30  ;;  %v1825_v56 = vadd.f32 %v1824_v24, %v1661_v10  ;;  %v1685_v25 = vadd.f32 %v1684_v13, %v1513_v20  ;;  %v1928_v13 = vld [vmem:[%s5944_s6 + $0x28] sm:$0xff]  ;;  %vm2022_vm14 = vcmp.gt.f32.partialorder %v3811_v53, 0.5 }
 0x3ba   :  { %v4330_v1 = vpop.f32.mrf.mxu1  ;;  %vm1936_vm6 = vcmp.gt.f32.partialorder %v1928_v13, 0.5  ;;  %v3816_v13 = vld [vmem:[%s5944_s6 + $0x78] sm:$0xff] }
 0x3bb   :  { %1890 = vrot.lane.b32.xlu0 %v1813_v18, %s4579_s30  ;;  %v1843_v17 = vadd.f32 %v4330_v1, %v1679_v6 }
 0x3bc   :  { %v1836_v8 = vpop.f32.mrf.mxu1 }
 0x3bd   :  { %1896 = vrot.lane.b32.xlu1 %v1831_v54, %s4579_s30  ;;  %v1837_v46 = vadd.f32 %v1836_v8, %v1673_v43  ;;  %v1926_v8 = vld [vmem:[%s5944_s6 + $0x18] sm:$0xff] }
 0x3be   :  { %v4333_v51 = vpop.f32.mrf.mxu1  ;;  %vm1934_vm4 = vcmp.gt.f32.partialorder %v1926_v8, 0.5  ;;  %v3813_v8 = vld [vmem:[%s5944_s6 + $0x60] sm:$0xff] }
 0x3bf   :  { %1872 = vrot.lane.b32.xlu0 %v1831_v54, %s4578_s4  ;;  %v1855_v19 = vadd.f32 %v4333_v51, %v1691_v4 }
 0x3c0   :  { %v1848_v60 = vpop.f32.mrf.mxu1 }
 0x3c1   :  { %1894 = vrot.lane.b32.xlu1 %v1825_v56, %s4579_s30  ;;  %v1849_v34 = vadd.f32 %v1848_v60, %v1685_v25  ;;  %v1927_v25 = vld [vmem:[%s5944_s6 + $0x20] sm:$0xff] }
 0x3c2   :  { %vm1935_vm7 = vcmp.gt.f32.partialorder %v1927_v25, 0.5 }
 0x3c3   :  { %1870 = vrot.lane.b32.xlu0 %v1825_v56, %s4578_s4 }
 0x3c5   :  { %1900 = vrot.lane.b32.xlu1 %v1843_v17, %s4579_s30 }
 0x3c7   :  { %1876 = vrot.lane.b32.xlu0 %v1843_v17, %s4578_s4 }
 0x3c9   :  { %1898 = vrot.lane.b32.xlu1 %v1837_v46, %s4579_s30 }
 0x3cb   :  { %1874 = vrot.lane.b32.xlu0 %v1837_v46, %s4578_s4 }
 0x3cd   :  { %1902 = vrot.lane.b32.xlu1 %v1849_v34, %s4579_s30 }
 0x3cf   :  { %1878 = vrot.lane.b32.xlu0 %v1849_v34, %s4578_s4 }
 0x3d1   :  { %1904 = vrot.lane.b32.xlu1 %v1855_v19, %s4579_s30  ;;  %s4584_s30 = smov 124  }
 0x3d3   :  { %1880 = vrot.lane.b32.xlu0 %v1855_v19, %s4578_s4 }
 0x427   :  { %v1869_v52 = vpop.permute.xlu1 %1868 }
 0x429   :  { %v1867_v55 = vpop.permute.xlu0 %1866 }
 0x42b   :  { %v1893_v2 = vpop.permute.xlu1 %1892 }
 0x42c   :  { %v1916_v38 = vsel %vm1914_vm1, %v1869_v52, %v1893_v2  ;;  %v1929_v52 = vld [vmem:[%s5944_s6 + $0x30] sm:$0xff] }
 0x42d   :  { %v1891_v23 = vpop.permute.xlu0 %1890  ;;  %1949 = vrot.lane.b32.xlu1 %v1916_v38, %s4580_s3  ;;  %vm1937_vm8 = vcmp.gt.f32.partialorder %v1929_v52, 0.5 }
 0x42e   :  { %v1915_v5 = vsel %vm1914_vm1, %v1867_v55, %v1891_v23  ;;  %v1930_v23 = vld [vmem:[%s5944_s6 + $0x38] sm:$0xff] }
 0x42f   :  { %v1897_v14 = vpop.permute.xlu1 %1896  ;;  %1947 = vrot.lane.b32.xlu0 %v1915_v5, %s4580_s3  ;;  %vm1938_vm9 = vcmp.gt.f32.partialorder %v1930_v23, 0.5 }
 0x431   :  { %v1873_v44 = vpop.permute.xlu0 %1872  ;;  %1973 = vrot.lane.b32.xlu1 %v1916_v38, %s4581_s11 }
 0x432   :  { %v1918_v47 = vsel %vm1914_vm1, %v1873_v44, %v1897_v14 }
 0x433   :  { %v1895_v57 = vpop.permute.xlu1 %1894  ;;  %1971 = vrot.lane.b32.xlu0 %v1915_v5, %s4581_s11 }
 0x435   :  { %v1871_v49 = vpop.permute.xlu0 %1870  ;;  %1977 = vrot.lane.b32.xlu1 %v1918_v47, %s4581_s11 }
 0x436   :  { %v1917_v27 = vsel %vm1914_vm1, %v1871_v49, %v1895_v57 }
 0x437   :  { %v1901_v40 = vpop.permute.xlu1 %1900  ;;  %1953 = vrot.lane.b32.xlu0 %v1918_v47, %s4580_s3 }
 0x439   :  { %v1877_v50 = vpop.permute.xlu0 %1876  ;;  %1975 = vrot.lane.b32.xlu1 %v1917_v27, %s4581_s11 }
 0x43a   :  { %v1920_v30 = vsel %vm1914_vm1, %v1877_v50, %v1901_v40  ;;  %v3810_v40 = vld [vmem:[%s5944_s6 + $0x48] sm:$0xff]  ;;  %v3809_v50 = vld [vmem:[%s5944_s6 + $0x40] sm:$0xff] }
 0x43b   :  { %v1899_v45 = vpop.permute.xlu1 %1898  ;;  %1951 = vrot.lane.b32.xlu0 %v1917_v27, %s4580_s3  ;;  %vm2021_vm11 = vcmp.gt.f32.partialorder %v3810_v40, 0.5  ;;  %vm2020_vm12 = vcmp.gt.f32.partialorder %v3809_v50, 0.5  ;;  %v3833_v40 = vld [vmem:[%s5944_s6 + $0x100] sm:$0xff]  ;;  %v3819_v50 = vld [vmem:[%s5944_s6 + $0x90] sm:$0xff] }
 0x43d   :  { %v1875_v15 = vpop.permute.xlu0 %1874  ;;  %1981 = vrot.lane.b32.xlu1 %v1920_v30, %s4581_s11 }
 0x43e   :  { %v5311_v63 = vsel %vm1914_vm1, %v1875_v15, %v1899_v45 }
 0x43f   :  { %1957 = vrot.lane.b32.xlu0 %v1920_v30, %s4580_s3  ;;  %v1903_v18 = vpop.permute.xlu1 %1902 }
 0x441   :  { %1979 = vrot.lane.b32.xlu1 %v5311_v63, %s4581_s11  ;;  %v1879_v22 = vpop.permute.xlu0 %1878 }
 0x442   :  { %v5317_v58 = vsel %vm1914_vm1, %v1879_v22, %v1903_v18 }
 0x443   :  { %1955 = vrot.lane.b32.xlu0 %v5311_v63, %s4580_s3  ;;  %v1905_v39 = vpop.permute.xlu1 %1904 }
 0x445   :  { %1983 = vrot.lane.b32.xlu1 %v5317_v58, %s4581_s11  ;;  %v1881_v61 = vpop.permute.xlu0 %1880 }
 0x446   :  { %v5323_v24 = vsel %vm1914_vm1, %v1881_v61, %v1905_v39  ;;  %v3812_v61 = vld [vmem:[%s5944_s6 + $0x58] sm:$0xff] }
 0x447   :  { %1959 = vrot.lane.b32.xlu0 %v5317_v58, %s4580_s3  ;;  %vm2023_vm13 = vcmp.gt.f32.partialorder %v3812_v61, 0.5 }
 0x449   :  { %1985 = vrot.lane.b32.xlu1 %v5323_v24, %s4581_s11 }
 0x44b   :  { %1961 = vrot.lane.b32.xlu0 %v5323_v24, %s4580_s3 }
 0x49f   :  { %v1950_v59 = vpop.permute.xlu1 %1949 }
 0x4a1   :  { %v1948_v29 = vpop.permute.xlu0 %1947 }
 0x4a3   :  { %v1974_v54 = vpop.permute.xlu1 %1973 }
 0x4a4   :  { %v1996_v1 = vsel %vm1914_vm1, %v1950_v59, %v1974_v54 }
 0x4a5   :  { %v1972_v0 = vpop.permute.xlu0 %1971  ;;  %v5335_v10 = vsel %vm1932_vm2, %v1996_v1, %v1916_v38 }
 0x4a6   :  { %v1995_v3 = vsel %vm1914_vm1, %v1948_v29, %v1972_v0  ;;  %2038 = vrot.lane.b32.xlu1 %v5335_v10, %s4582_s16  ;;  %v3814_v0 = vld [vmem:[%s5944_s6 + $0x68] sm:$0xff] }
 0x4a7   :  { %v1978_v37 = vpop.permute.xlu1 %1977  ;;  %v5340_v56 = vsel %vm1931_vm3, %v1995_v3, %v1915_v5  ;;  %vm2025_vm15 = vcmp.gt.f32.partialorder %v3814_v0, 0.5  ;;  %vm2027_vm3 = vcmp.gt.f32.partialorder %v3816_v13, 0.5  ;;  %v3835_v0 = vld [vmem:[%s5944_s6 + $0x110] sm:$0xff] }
 0x4a8   :  { %2036 = vrot.lane.b32.xlu0 %v5340_v56, %s4582_s16 }
 0x4a9   :  { %v1954_v28 = vpop.permute.xlu0 %1953 }
 0x4aa   :  { %v1998_v6 = vsel %vm1914_vm1, %v1954_v28, %v1978_v37  ;;  %2062 = vrot.lane.b32.xlu1 %v5335_v10, %s4583_s18 }
 0x4ab   :  { %v1976_v12 = vpop.permute.xlu1 %1975  ;;  %v5355_v51 = vsel %vm1934_vm4, %v1998_v6, %v1918_v47  ;;  %vm2174_vm4 = vcmask 31744  }
 0x4ac   :  { %2060 = vrot.lane.b32.xlu0 %v5340_v56, %s4583_s18 }
 0x4ad   :  { %v1952_v17 = vpop.permute.xlu0 %1951 }
 0x4ae   :  { %v1997_v31 = vsel %vm1914_vm1, %v1952_v17, %v1976_v12  ;;  %2066 = vrot.lane.b32.xlu1 %v5355_v51, %s4583_s18  ;;  %v3815_v17 = vld [vmem:[%s5944_s6 + $0x70] sm:$0xff] }
 0x4af   :  { %v1982_v43 = vpop.permute.xlu1 %1981  ;;  %v5365_v46 = vsel %vm1933_vm5, %v1997_v31, %v1917_v27  ;;  %vm2026_vm2 = vcmp.gt.f32.partialorder %v3815_v17, 0.5 }
 0x4b0   :  { %2042 = vrot.lane.b32.xlu0 %v5355_v51, %s4582_s16 }
 0x4b1   :  { %v1958_v20 = vpop.permute.xlu0 %1957 }
 0x4b2   :  { %v2000_v60 = vsel %vm1914_vm1, %v1958_v20, %v1982_v43  ;;  %2064 = vrot.lane.b32.xlu1 %v5365_v46, %s4583_s18 }
 0x4b3   :  { %v1980_v16 = vpop.permute.xlu1 %1979  ;;  %v5375_v34 = vsel %vm1936_vm6, %v2000_v60, %v1920_v30 }
 0x4b4   :  { %2040 = vrot.lane.b32.xlu0 %v5365_v46, %s4582_s16 }
 0x4b5   :  { %v1956_v26 = vpop.permute.xlu0 %1955 }
 0x4b6   :  { %v1999_v4 = vsel %vm1914_vm1, %v1956_v26, %v1980_v16  ;;  %2070 = vrot.lane.b32.xlu1 %v5375_v34, %s4583_s18 }
 0x4b7   :  { %v1984_v19 = vpop.permute.xlu1 %1983  ;;  %v5386_v2 = vsel %vm1935_vm7, %v1999_v4, %v5311_v63  ;;  %vm2199_vm7 = vcmask 1046528  }
 0x4b8   :  { %2046 = vrot.lane.b32.xlu0 %v5375_v34, %s4582_s16 }
 0x4b9   :  { %v1960_v55 = vpop.permute.xlu0 %1959 }
 0x4ba   :  { %v2001_v38 = vsel %vm1914_vm1, %v1960_v55, %v1984_v19  ;;  %2068 = vrot.lane.b32.xlu1 %v5386_v2, %s4583_s18  ;;  %v3817_v19 = vld [vmem:[%s5944_s6 + $0x80] sm:$0xff] }
 0x4bb   :  { %v1986_v5 = vpop.permute.xlu1 %1985  ;;  %v5397_v44 = vsel %vm1937_vm8, %v2001_v38, %v5317_v58  ;;  %vm2110_vm6 = vcmp.gt.f32.partialorder %v3817_v19, 0.5 }
 0x4bc   :  { %2044 = vrot.lane.b32.xlu0 %v5386_v2, %s4582_s16 }
 0x4bd   :  { %v1962_v14 = vpop.permute.xlu0 %1961 }
 0x4be   :  { %v2002_v57 = vsel %vm1914_vm1, %v1962_v14, %v1986_v5  ;;  %2072 = vrot.lane.b32.xlu1 %v5397_v44, %s4583_s18  ;;  %vm2024_vm1 = vcmp.gt.f32.partialorder %v3813_v8, 0.5 }
 0x4bf   :  { %v5405_v47 = vsel %vm1938_vm9, %v2002_v57, %v5323_v24  ;;  %vm2112_vm9 = vcmp.gt.f32.partialorder %v3819_v50, 0.5 }
 0x4c0   :  { %2048 = vrot.lane.b32.xlu0 %v5397_v44, %s4582_s16 }
 0x4c2   :  { %2074 = vrot.lane.b32.xlu1 %v5405_v47, %s4583_s18 }
 0x4c4   :  { %2050 = vrot.lane.b32.xlu0 %v5405_v47, %s4582_s16 }
 0x518   :  { %v2039_v49 = vpop.permute.xlu1 %2038 }
 0x51a   :  { %v2037_v27 = vpop.permute.xlu0 %2036 }
 0x51c   :  { %v2063_v45 = vpop.permute.xlu1 %2062 }
 0x51d   :  { %v2086_v30 = vsel %vm2084_vm10, %v2039_v49, %v2063_v45 }
 0x51e   :  { %v2061_v15 = vpop.permute.xlu0 %2060  ;;  %v5419_v63 = vsel %vm2021_vm11, %v2086_v30, %v5335_v10 }
 0x51f   :  { %v2085_v18 = vsel %vm2084_vm10, %v2037_v27, %v2061_v15  ;;  %2128 = vrot.lane.b32.xlu1 %v5419_v63, %s4584_s30 }
 0x520   :  { %v2067_v22 = vpop.permute.xlu1 %2066  ;;  %v5425_v58 = vsel %vm2020_vm12, %v2085_v18, %v5340_v56 }
 0x521   :  { %2126 = vrot.lane.b32.xlu0 %v5425_v58, %s4584_s30 }
 0x522   :  { %v2043_v39 = vpop.permute.xlu0 %2042 }
 0x523   :  { %v2088_v24 = vsel %vm2084_vm10, %v2043_v39, %v2067_v22  ;;  %2152 = vrot.lane.b32.xlu1 %v5419_v63, %s4585_s12 }
 0x524   :  { %v2065_v59 = vpop.permute.xlu1 %2064  ;;  %v5441_v62 = vsel %vm2023_vm13, %v2088_v24, %v5355_v51  ;;  %v3826_v24 = vld [vmem:[%s5944_s6 + $0xc8] sm:$0xff] }
 0x525   :  { %2150 = vrot.lane.b32.xlu0 %v5425_v58, %s4585_s12 }
 0x526   :  { %v2041_v29 = vpop.permute.xlu0 %2040 }
 0x527   :  { %v2087_v54 = vsel %vm2084_vm10, %v2041_v29, %v2065_v59  ;;  %2156 = vrot.lane.b32.xlu1 %v5441_v62, %s4585_s12  ;;  %v3822_v29 = vld [vmem:[%s5944_s6 + $0xa8] sm:$0xff] }
 0x528   :  { %v2071_v1 = vpop.permute.xlu1 %2070  ;;  %v5452_v3 = vsel %vm2022_vm14, %v2087_v54, %v5365_v46  ;;  %v3827_v54 = vld [vmem:[%s5944_s6 + $0xd0] sm:$0xff]  ;;  %vm2299_vm14 = vcmask 64512  }
 0x529   :  { %2132 = vrot.lane.b32.xlu0 %v5441_v62, %s4584_s30 }
 0x52a   :  { %v2047_v10 = vpop.permute.xlu0 %2046 }
 0x52b   :  { %v2090_v37 = vsel %vm2084_vm10, %v2047_v10, %v2071_v1  ;;  %2154 = vrot.lane.b32.xlu1 %v5452_v3, %s4585_s12  ;;  %v3834_v10 = vld [vmem:[%s5944_s6 + $0x108] sm:$0xff] }
 0x52c   :  { %v2069_v56 = vpop.permute.xlu1 %2068  ;;  %v5463_v6 = vsel %vm2025_vm15, %v2090_v37, %v5375_v34  ;;  %v3818_v34 = vld [vmem:[%s5944_s6 + $0x88] sm:$0xff]  ;;  %v3821_v37 = vld [vmem:[%s5944_s6 + $0xa0] sm:$0xff]  ;;  %vm2332_vm15 = vcmask 130048  }
 0x52d   :  { %2130 = vrot.lane.b32.xlu0 %v5452_v3, %s4584_s30  ;;  %vm2111_vm5 = vcmp.gt.f32.partialorder %v3818_v34, 0.5  ;;  %vm2114_vm11 = vcmp.gt.f32.partialorder %v3821_v37, 0.5 }
 0x52e   :  { %v2045_v28 = vpop.permute.xlu0 %2044 }
 0x52f   :  { %v2089_v12 = vsel %vm2084_vm10, %v2045_v28, %v2069_v56  ;;  %2160 = vrot.lane.b32.xlu1 %v5463_v6, %s4585_s12 }
 0x530   :  { %v2073_v41 = vpop.permute.xlu1 %2072  ;;  %v5474_v31 = vsel %vm2024_vm1, %v2089_v12, %v5386_v2 }
 0x531   :  { %2136 = vrot.lane.b32.xlu0 %v5463_v6, %s4584_s30 }
 0x532   :  { %v2049_v51 = vpop.permute.xlu0 %2048 }
 0x533   :  { %v2091_v43 = vsel %vm2084_vm10, %v2049_v51, %v2073_v41  ;;  %2158 = vrot.lane.b32.xlu1 %v5474_v31, %s4585_s12 }
 0x534   :  { %v2075_v20 = vpop.permute.xlu1 %2074  ;;  %v5485_v60 = vsel %vm2026_vm2, %v2091_v43, %v5397_v44  ;;  %v3820_v44 = vld [vmem:[%s5944_s6 + $0x98] sm:$0xff] }
 0x535   :  { %2134 = vrot.lane.b32.xlu0 %v5474_v31, %s4584_s30  ;;  %vm2113_vm8 = vcmp.gt.f32.partialorder %v3820_v44, 0.5 }
 0x536   :  { %v2051_v46 = vpop.permute.xlu0 %2050 }
 0x537   :  { %v2092_v16 = vsel %vm2084_vm10, %v2051_v46, %v2075_v20  ;;  %2162 = vrot.lane.b32.xlu1 %v5485_v60, %s4585_s12  ;;  %vm2115_vm10 = vcmp.gt.f32.partialorder %v3822_v29, 0.5  ;;  %v3831_v29 = vld [vmem:[%s5944_s6 + $0xf0] sm:$0xff] }
 0x538   :  { %v5493_v25 = vsel %vm2027_vm3, %v2092_v16, %v5405_v47  ;;  %v3825_v47 = vld [vmem:[%s5944_s6 + $0xc0] sm:$0xff] }
 0x539   :  { %2138 = vrot.lane.b32.xlu0 %v5485_v60, %s4584_s30 }
 0x53b   :  { %2164 = vrot.lane.b32.xlu1 %v5493_v25, %s4585_s12  ;;  %s4586_s12 = smov 8  }
 0x53d   :  { %2140 = vrot.lane.b32.xlu0 %v5493_v25, %s4584_s30 }
 0x591   :  { %v2129_v26 = vpop.permute.xlu1 %2128 }
 0x593   :  { %v2127_v4 = vpop.permute.xlu0 %2126 }
 0x595   :  { %v2153_v52 = vpop.permute.xlu1 %2152 }
 0x596   :  { %v2176_v55 = vsel %vm2174_vm4, %v2129_v26, %v2153_v52  ;;  %v3823_v26 = vld [vmem:[%s5944_s6 + $0xb0] sm:$0xff] }
 0x597   :  { %v2184_v2 = vsel %vm2111_vm5, %v2176_v55, %v5419_v63  ;;  %v2151_v38 = vpop.permute.xlu0 %2150  ;;  %v3829_v55 = vld [vmem:[%s5944_s6 + $0xe0] sm:$0xff]  ;;  %vm2116_vm12 = vcmp.gt.f32.partialorder %v3823_v26, 0.5 }
 0x598   :  { %v2175_v23 = vsel %vm2174_vm4, %v2127_v4, %v2151_v38  ;;  %v2201_v57 = vrot.slane %v2184_v2, 1  ;;  %v2235_v12 = vmul.f32 %v3826_v24, %v2184_v2  ;;  %v3828_v4 = vld [vmem:[%s5944_s6 + $0xd8] sm:$0xff]  ;;  %v3837_v38 = vld [vmem:[%s5944_s6 + $0x120] sm:$0xff] }
 0x599   :  { %v5509_v5 = vsel %vm2110_vm6, %v2175_v23, %v5425_v58  ;;  %v2157_v14 = vpop.permute.xlu1 %2156 }
 0x59a   :  { %v2200_v49 = vrot.slane %v5509_v5, 1  ;;  %v2234_v15 = vmul.f32 %v3825_v47, %v5509_v5 }
 0x59b   :  { %v2133_v27 = vpop.permute.xlu0 %2132 }
 0x59c   :  { %v2178_v45 = vsel %vm2174_vm4, %v2133_v27, %v2157_v14  ;;  %v2202_v30 = vsel %vm2199_vm7, %v2200_v49, %v2201_v57  ;;  %v3824_v14 = vld [vmem:[%s5944_s6 + $0xb8] sm:$0xff] }
 0x59d   :  { %v2155_v63 = vpop.permute.xlu1 %2154  ;;  %v2251_v18 = vmul.f32 %v3833_v40, %v2202_v30  ;;  %v2186_v22 = vsel %vm2113_vm8, %v2178_v45, %v5441_v62  ;;  %vm2117_vm13 = vcmp.gt.f32.partialorder %v3824_v14, 0.5 }
 0x59e   :  { %v2205_v62 = vrot.slane %v2186_v22, 1  ;;  %v2237_v44 = vmul.f32 %v3828_v4, %v2186_v22 }
 0x59f   :  { %v2131_v58 = vpop.permute.xlu0 %2130  ;;  %v5530_v61 = vadd.f32 %v2251_v18, %v2234_v15  ;;  %v3830_v15 = vld [vmem:[%s5944_s6 + $0xe8] sm:$0xff] }
 0x5a0   :  { %v2177_v39 = vsel %vm2174_vm4, %v2131_v58, %v2155_v63  ;;  %v3838_v18 = vld [vmem:[%s5944_s6 + $0x128] sm:$0xff] }
 0x5a1   :  { %v2185_v59 = vsel %vm2112_vm9, %v2177_v39, %v5452_v3  ;;  %v2161_v53 = vpop.permute.xlu1 %2160  ;;  %2275 = vrot.lane.b32.xlu0 %v5530_v61, %s4586_s12 }
 0x5a2   :  { %v2203_v1 = vrot.slane %v2185_v59, 1  ;;  %v2236_v41 = vmul.f32 %v3827_v54, %v2185_v59 }
 0x5a3   :  { %v2137_v3 = vpop.permute.xlu0 %2136 }
 0x5a4   :  { %v2180_v56 = vsel %vm2174_vm4, %v2137_v3, %v2161_v53  ;;  %v2206_v8 = vsel %vm2199_vm7, %v2203_v1, %v2205_v62  ;;  %v2204_v28 = vsel %vm2199_vm7, %v2201_v57, %v2203_v1  ;;  %v3832_v1 = vld [vmem:[%s5944_s6 + $0xf8] sm:$0xff]  ;;  %v3839_v3 = vld [vmem:[%s5944_s6 + $0x130] sm:$0xff] }
 0x5a5   :  { %v2159_v17 = vpop.permute.xlu1 %2158  ;;  %v2253_v51 = vmul.f32 %v3835_v0, %v2206_v8  ;;  %v2252_v43 = vmul.f32 %v3834_v10, %v2204_v28  ;;  %v2188_v13 = vsel %vm2115_vm10, %v2180_v56, %v5463_v6  ;;  %v3840_v10 = vld [vmem:[%s5944_s6 + $0x138] sm:$0xff] }
 0x5a6   :  { %v2209_v6 = vrot.slane %v2188_v13, 1  ;;  %v2239_v53 = vmul.f32 %v3830_v15, %v2188_v13 }
 0x5a7   :  { %v2135_v20 = vpop.permute.xlu0 %2134  ;;  %v5558_v46 = vadd.f32 %v2253_v51, %v2236_v41  ;;  %v5560_v16 = vadd.f32 %v2252_v43, %v2235_v12 }
 0x5a8   :  { %v2179_v34 = vsel %vm2174_vm4, %v2135_v20, %v2159_v17 }
 0x5a9   :  { %v2187_v19 = vsel %vm2114_vm11, %v2179_v34, %v5474_v31  ;;  %v2163_v52 = vpop.permute.xlu1 %2162  ;;  %2279 = vrot.lane.b32.xlu0 %v5558_v46, %s4586_s12  ;;  %2277 = vrot.lane.b32.xlu1 %v5560_v16, %s4586_s12  ;;  %v3836_v31 = vld [vmem:[%s5944_s6 + $0x118] sm:$0xff] }
 0x5aa   :  { %v2207_v2 = vrot.slane %v2187_v19, 1  ;;  %v2238_v27 = vmul.f32 %v3829_v55, %v2187_v19 }
 0x5ab   :  { %v2139_v23 = vpop.permute.xlu0 %2138 }
 0x5ac   :  { %v2181_v57 = vsel %vm2174_vm4, %v2139_v23, %v2163_v52  ;;  %v2210_v47 = vsel %vm2199_vm7, %v2207_v2, %v2209_v6  ;;  %v2208_v40 = vsel %vm2199_vm7, %v2205_v62, %v2207_v2 }
 0x5ad   :  { %v2189_v50 = vsel %vm2116_vm12, %v2181_v57, %v5485_v60  ;;  %v2255_v45 = vmul.f32 %v3837_v38, %v2210_v47  ;;  %v2254_v30 = vmul.f32 %v3836_v31, %v2208_v40  ;;  %v2165_v22 = vpop.permute.xlu1 %2164  ;;  %v2320_v47 = vld [vmem:[%s5945_s7 + $0x20] sm:$0xff] }
 0x5ae   :  { %v2211_v63 = vrot.slane %v2189_v50, 1  ;;  %v2240_v8 = vmul.f32 %v3831_v29, %v2189_v50 }
 0x5af   :  { %v2141_v58 = vpop.permute.xlu0 %2140  ;;  %v2263_v39 = vadd.f32 %v2255_v45, %v2238_v27  ;;  %v2262_v24 = vadd.f32 %v2254_v30, %v2237_v44  ;;  %v2321_v45 = vld [vmem:[%s5945_s7 + $0x28] sm:$0xff] }
 0x5b0   :  { %v2182_v59 = vsel %vm2174_vm4, %v2141_v58, %v2165_v22  ;;  %v2212_v60 = vsel %vm2199_vm7, %v2209_v6, %v2211_v63 }
 0x5b1   :  { %v2190_v62 = vsel %vm2117_vm13, %v2182_v59, %v5493_v25  ;;  %2283 = vrot.lane.b32.xlu0 %v2263_v39, %s4586_s12  ;;  %2281 = vrot.lane.b32.xlu1 %v2262_v24, %s4586_s12  ;;  %v2256_v54 = vmul.f32 %v3838_v18, %v2212_v60 }
 0x5b2   :  { %v2213_v0 = vrot.slane %v2190_v62, 1  ;;  %v2241_v28 = vmul.f32 %v3832_v1, %v2190_v62 }
 0x5b3   :  { %v2264_v37 = vadd.f32 %v2256_v54, %v2239_v53 }
 0x5b4   :  { %v2224_v25 = vsel %vm2199_vm7, %v2213_v0, %v2200_v49  ;;  %v2214_v56 = vsel %vm2199_vm7, %v2211_v63, %v2213_v0  ;;  %v2316_v49 = vld [vmem:[%s5945_s7] sm:$0xff] }
 0x5b5   :  { %2285 = vrot.lane.b32.xlu1 %v2264_v37, %s4586_s12  ;;  %v2258_v12 = vmul.f32 %v3840_v10, %v2224_v25  ;;  %v2257_v41 = vmul.f32 %v3839_v3, %v2214_v56 }
 0x5b7   :  { %v2266_v17 = vadd.f32 %v2258_v12, %v2241_v28  ;;  %v2265_v51 = vadd.f32 %v2257_v41, %v2240_v8 }
 0x5b9   :  { %2289 = vrot.lane.b32.xlu1 %v2266_v17, %s4586_s12  ;;  %2287 = vrot.lane.b32.xlu0 %v2265_v51, %s4586_s12 }
 0x613   :  { %v2276_v43 = vpop.permute.xlu0 %2275 }
 0x614   :  { %v2300_v5 = vsel %vm2299_vm14, %v5530_v61, %v2276_v43  ;;  %v2317_v61 = vld [vmem:[%s5945_s7 + $0x8] sm:$0xff] }
 0x615   :  { %v2308_v13 = vadd.f32 %v2300_v5, %v5247_v7  ;;  %v2318_v7 = vld [vmem:[%s5945_s7 + $0x10] sm:$0xff] }
 0x617   :  { %v2324_v20 = vadd.f32 %v2316_v49, %v2308_v13 }
 0x619   :  { %v2333_v26 = vsel %vm2332_vm15, %v2324_v20, -inf }
 0x61a   :  { %2334 = vmax.xlane.f32.xlu0 %v2333_v26 }
 0x61b   :  { %v2278_v34 = vpop.permute.xlu1 %2277  ;;  %v2280_v4 = vpop.permute.xlu0 %2279 }
 0x61c   :  { %v2301_v19 = vsel %vm2299_vm14, %v5560_v16, %v2278_v34  ;;  %v2302_v52 = vsel %vm2299_vm14, %v5558_v46, %v2280_v4 }
 0x61d   :  { %v2309_v6 = vadd.f32 %v2301_v19, %v5245_v33  ;;  %v2310_v55 = vadd.f32 %v2302_v52, %v5251_v42  ;;  %v2319_v33 = vld [vmem:[%s5945_s7 + $0x18] sm:$0xff] }
 0x61f   :  { %v2325_v2 = vadd.f32 %v2317_v61, %v2309_v6  ;;  %v2326_v38 = vadd.f32 %v2318_v7, %v2310_v55 }
 0x621   :  { %v2336_v31 = vsel %vm2332_vm15, %v2325_v2, -inf  ;;  %v2339_v16 = vsel %vm2332_vm15, %v2326_v38, -inf }
 0x622   :  { %2337 = vmax.xlane.f32.xlu1 %v2336_v31  ;;  %2340 = vmax.xlane.f32.xlu0 %v2339_v16 }
 0x623   :  { %v2282_v46 = vpop.permute.xlu1 %2281  ;;  %v2284_v23 = vpop.permute.xlu0 %2283 }
 0x624   :  { %v2303_v14 = vsel %vm2299_vm14, %v2262_v24, %v2282_v46  ;;  %v2304_v44 = vsel %vm2299_vm14, %v2263_v39, %v2284_v23  ;;  %v2323_v39 = vld [vmem:[%s5945_s7 + $0x38] sm:$0xff]  ;;  %v2322_v24 = vld [vmem:[%s5945_s7 + $0x30] sm:$0xff]  ;;  %s4587_s7 = smov 64  }
 0x625   :  { %v2311_v42 = vadd.f32 %v2303_v14, %v5249_v9  ;;  %v2312_v57 = vadd.f32 %v2304_v44, %v5259_v35 }
 0x627   :  { %v2286_v40 = vpop.permute.xlu1 %2285  ;;  %v2327_v27 = vadd.f32 %v2319_v33, %v2311_v42  ;;  %v2328_v63 = vadd.f32 %v2320_v47, %v2312_v57 }
 0x628   :  { %v2305_v50 = vsel %vm2299_vm14, %v2264_v37, %v2286_v40 }
 0x629   :  { %v2313_v30 = vadd.f32 %v2305_v50, %v5255_v21  ;;  %v2342_v15 = vsel %vm2332_vm15, %v2327_v27, -inf  ;;  %v2345_v53 = vsel %vm2332_vm15, %v2328_v63, -inf }
 0x62a   :  { %2343 = vmax.xlane.f32.xlu0 %v2342_v15 }
 0x62b   :  { %v2290_v9 = vpop.permute.xlu1 %2289  ;;  %v2288_v35 = vpop.permute.xlu0 %2287  ;;  %v2329_v18 = vadd.f32 %v2321_v45, %v2313_v30 }
 0x62c   :  { %v2307_v22 = vsel %vm2299_vm14, %v2266_v17, %v2290_v9  ;;  %v2306_v58 = vsel %vm2299_vm14, %v2265_v51, %v2288_v35 }
 0x62d   :  { %v2315_v21 = vadd.f32 %v2307_v22, %v5261_v11  ;;  %v2314_v59 = vadd.f32 %v2306_v58, %v5263_v48  ;;  %v2348_v60 = vsel %vm2332_vm15, %v2329_v18, -inf }
 0x62e   :  { %2349 = vmax.xlane.f32.xlu1 %v2348_v60  ;;  %2346 = vmax.xlane.f32.xlu0 %v2345_v53 }
 0x62f   :  { %v2331_v29 = vadd.f32 %v2323_v39, %v2315_v21  ;;  %v2330_v62 = vadd.f32 %v2322_v24, %v2314_v59 }
 0x631   :  { %v2354_v54 = vsel %vm2332_vm15, %v2331_v29, -inf  ;;  %v2351_v1 = vsel %vm2332_vm15, %v2330_v62, -inf }
 0x632   :  { %2355 = vmax.xlane.f32.xlu1 %v2354_v54  ;;  %2352 = vmax.xlane.f32.xlu0 %v2351_v1 }
 0x6a3   :  { %v2335_v0 = vpop.xlane.xlu0 %2334 }
 0x6a4   :  { %v2357_v10 = vsub.f32 %v2324_v20, %v2335_v0 }
 0x6a6   :  { %v2365_v3 = vmul.f32 1.442695, %v2357_v10 }
 0x6a8   :  { %4514 = vpow2.f32 %v2365_v3 }
 0x6ab   :  { %v2338_v11 = vpop.xlane.xlu1 %2337  ;;  %v2341_v48 = vpop.xlane.xlu0 %2340 }
 0x6ac   :  { %v2358_v37 = vsub.f32 %v2325_v2, %v2338_v11  ;;  %v2359_v25 = vsub.f32 %v2326_v38, %v2341_v48 }
 0x6ae   :  { %v2367_v56 = vmul.f32 1.442695, %v2358_v37  ;;  %v2369_v8 = vmul.f32 1.442695, %v2359_v25 }
 0x6b0   :  { %4516 = vpow2.f32 %v2367_v56 }
 0x6b1   :  { %4518 = vpow2.f32 %v2369_v8 }
 0x6b3   :  { %v2344_v28 = vpop.xlane.xlu0 %2343 }
 0x6b4   :  { %v2360_v12 = vsub.f32 %v2327_v27, %v2344_v28 }
 0x6b5   :  { %v4515_v41 = vpop.eup %4514 }
 0x6b6   :  { %v2371_v17 = vmul.f32 1.442695, %v2360_v12  ;;  %v2381_v51 = vsel %vm2332_vm15, %v4515_v41, 0.0 }
 0x6b7   :  { %v2350_v43 = vpop.xlane.xlu1 %2349  ;;  %2382 = vadd.xlane.f32.xlu0 %v2381_v51  ;;  %v2347_v5 = vpop.xlane.xlu0 %2346 }
 0x6b8   :  { %4520 = vpow2.f32 %v2371_v17  ;;  %v2361_v49 = vsub.f32 %v2328_v63, %v2347_v5  ;;  %v2362_v13 = vsub.f32 %v2329_v18, %v2350_v43 }
 0x6ba   :  { %v2373_v20 = vmul.f32 1.442695, %v2361_v49  ;;  %v2375_v61 = vmul.f32 1.442695, %v2362_v13 }
 0x6bb   :  { %v2356_v26 = vpop.xlane.xlu1 %2355  ;;  %v2353_v34 = vpop.xlane.xlu0 %2352 }
 0x6bc   :  { %v2364_v4 = vsub.f32 %v2331_v29, %v2356_v26  ;;  %v2363_v19 = vsub.f32 %v2330_v62, %v2353_v34  ;;  %4522 = vpow2.f32 %v2373_v20 }
 0x6bd   :  { %v4517_v52 = vpop.eup %4516 }
 0x6be   :  { %v4519_v7 = vpop.eup %4518  ;;  %v2379_v6 = vmul.f32 1.442695, %v2364_v4  ;;  %v2377_v55 = vmul.f32 1.442695, %v2363_v19  ;;  %v2384_v2 = vsel %vm2332_vm15, %v4517_v52, 0.0 }
 0x6bf   :  { %2385 = vadd.xlane.f32.xlu1 %v2384_v2  ;;  %v2387_v38 = vsel %vm2332_vm15, %v4519_v7, 0.0 }
 0x6c0   :  { %4524 = vpow2.f32 %v2379_v6  ;;  %2388 = vadd.xlane.f32.xlu0 %v2387_v38 }
 0x6c1   :  { %4526 = vpow2.f32 %v2377_v55 }
 0x6c2   :  { %4528 = vpow2.f32 %v2375_v61 }
 0x6c5   :  { %v4521_v31 = vpop.eup %4520 }
 0x6c6   :  { %v2390_v16 = vsel %vm2332_vm15, %v4521_v31, 0.0 }
 0x6c7   :  { %2391 = vadd.xlane.f32.xlu1 %v2390_v16 }
 0x6c9   :  { %v5675_v46 = vpop.eup %4522 }
 0x6ca   :  { %v2393_v23 = vsel %vm2332_vm15, %v5675_v46, 0.0 }
 0x6cb   :  { %2394 = vadd.xlane.f32.xlu0 %v2393_v23 }
 0x6cd   :  { %v5679_v14 = vpop.eup %4524 }
 0x6ce   :  { %v5681_v44 = vpop.eup %4526  ;;  %v2402_v33 = vsel %vm2332_vm15, %v5679_v14, 0.0 }
 0x6cf   :  { %v5685_v42 = vpop.eup %4528  ;;  %2403 = vadd.xlane.f32.xlu1 %v2402_v33  ;;  %v2399_v57 = vsel %vm2332_vm15, %v5681_v44, 0.0 }
 0x6d0   :  { %2400 = vadd.xlane.f32.xlu0 %v2399_v57  ;;  %v2396_v47 = vsel %vm2332_vm15, %v5685_v42, 0.0 }
 0x6d3   :  { %2397 = vadd.xlane.f32.xlu1 %v2396_v47 }
 0x6e4   :  { %2421 = vrot.lane.b32.xlu1 %v4790_v36, %s4587_s7 }
 0x6e6   :  { %2423 = vrot.lane.b32.xlu0 %v4785_v32, %s4587_s7 }
 0x740   :  { %v2383_v40 = vpop.xlane.xlu0 %2382 }
 0x741   :  { %4530 = vrcp.f32 %v2383_v40 }
 0x748   :  { %v2386_v27 = vpop.xlane.xlu1 %2385 }
 0x749   :  { %4532 = vrcp.f32 %v2386_v27  ;;  %v2389_v50 = vpop.xlane.xlu0 %2388 }
 0x74a   :  { %4534 = vrcp.f32 %v2389_v50 }
 0x74e   :  { %v4531_v45 = vpop.eup %4530 }
 0x74f   :  { %v2406_v30 = vmul.f32 %v4531_v45, %v4515_v41 }
 0x750   :  { %v2392_v15 = vpop.xlane.xlu1 %2391 }
 0x751   :  { %4536 = vrcp.f32 %v2392_v15  ;;  %v2428_v63 = vsel %vm2332_vm15, %v2406_v30, 0 }
 0x752   :  { %v5694_v9 = vand.u32 4294901760, %v2428_v63 }
 0x754   :  { %4354 = vmatprep.mubr.f32.mxu1 %v5694_v9  ;;  %v5698_v36 = vsub.f32 %v2428_v63, %v5694_v9  ;;  %v2395_v32 = vpop.xlane.xlu0 %2394 }
 0x755   :  { %4538 = vrcp.f32 %v2395_v32 }
 0x756   :  { %v4533_v35 = vpop.eup %4532  ;;  %v2520_v18 = vand.u32 4294901760, %v5698_v36 }
 0x757   :  { %v4535_v22 = vpop.eup %4534  ;;  %v2408_v58 = vmul.f32 %v4533_v35, %v4517_v52 }
 0x758   :  { %v2404_v39 = vpop.xlane.xlu1 %2403  ;;  %v2521_v24 = vsub.f32 %v5698_v36, %v2520_v18  ;;  %v2410_v21 = vmul.f32 %v4535_v22, %v4519_v7 }
 0x759   :  { %v2431_v59 = vsel %vm2332_vm15, %v2408_v58, 0  ;;  %4540 = vrcp.f32 %v2404_v39  ;;  %v2401_v60 = vpop.xlane.xlu0 %2400 }
 0x75a   :  { %v5705_v53 = vand.u32 4294901760, %v2431_v59  ;;  %4542 = vrcp.f32 %v2401_v60  ;;  %v2522_v29 = vand.u32 4294901760, %v2521_v24  ;;  %v2434_v62 = vsel %vm2332_vm15, %v2410_v21, 0 }
 0x75b   :  { %v5708_v54 = vand.u32 4294901760, %v2434_v62 }
 0x75c   :  { %v2398_v1 = vpop.xlane.xlu1 %2397  ;;  %4338 = vmatprep.mubr.f32.mxu0 %v2522_v29  ;;  %v5711_v0 = vsub.f32 %v2431_v59, %v5705_v53 }
 0x75d   :  { %4544 = vrcp.f32 %v2398_v1  ;;  %v2424_v10 = vpop.permute.xlu0 %2423  ;;  %v5714_v3 = vsub.f32 %v2434_v62, %v5708_v54 }
 0x75e   :  { %v4537_v11 = vpop.eup %4536  ;;  %v5716_v48 = vand.u32 4294901760, %v2424_v10  ;;  %v2530_v37 = vand.u32 4294901760, %v5711_v0 }
 0x75f   :  { %v2540_v25 = vand.u32 4294901760, %v5714_v3  ;;  %v2412_v56 = vmul.f32 %v4537_v11, %v4521_v31 }
 0x760   :  { %v2628_v8 = vsub.f32 %v2424_v10, %v5716_v48  ;;  %4334 = vmatprep.subr.mxu0 %v5716_v48  ;;  %v2422_v28 = vpop.permute.xlu1 %2421  ;;  %v2531_v12 = vsub.f32 %v5711_v0, %v2530_v37 }
 0x761   :  { %v5725_v41 = vand.u32 4294901760, %v2422_v28  ;;  %4335 = vmatpush3.msra.mxu0 %v5716_v48  ;;  %v2541_v17 = vsub.f32 %v5714_v3, %v2540_v25  ;;  %v2437_v51 = vsel %vm2332_vm15, %v2412_v56, 0 }
 0x762   :  { %v5732_v43 = vand.u32 4294901760, %v2628_v8  ;;  %v2532_v5 = vand.u32 4294901760, %v2531_v12  ;;  %v5734_v49 = vand.u32 4294901760, %v2437_v51  ;;  %v4539_v13 = vpop.eup %4538 }
 0x763   :  { %v2635_v20 = vsub.f32 %v2422_v28, %v5725_v41  ;;  %4336 = vmatprep.subr.mxu0 %v5725_v41  ;;  %v2542_v26 = vand.u32 4294901760, %v2541_v17  ;;  %v2414_v19 = vmul.f32 %v4539_v13, %v5675_v46 }
 0x764   :  { %4337 = vmatpush3.msra.mxu0 %v5725_v41  ;;  %v2630_v34 = vsub.f32 %v2628_v8, %v5732_v43  ;;  %v5741_v4 = vsub.f32 %v2437_v51, %v5734_v49 }
 0x765   :  { %v5744_v52 = vand.u32 4294901760, %v2635_v20  ;;  %4339 = vmatmul.mubr.f32.vlgmr.msra.gmra.mxu0 %v2532_v5  ;;  %4366 = vmatprep.subr.mxu0 %v2628_v8  ;;  %v2440_v55 = vsel %vm2332_vm15, %v2414_v19, 0 }
 0x766   :  { %v4541_v61 = vpop.eup %4540  ;;  %4341 = vmatprep.mubr.f32.mxu0 %v2542_v26  ;;  %4367 = vmatpush3.msra.mxu0 %v2628_v8  ;;  %v2631_v7 = vand.u32 4294901760, %v2630_v34  ;;  %v2550_v6 = vand.u32 4294901760, %v5741_v4  ;;  %v5749_v31 = vand.u32 4294901760, %v2440_v55 }
 0x767   :  { %v4543_v2 = vpop.eup %4542  ;;  %4368 = vmatprep.subr.mxu0 %v2635_v20  ;;  %v2637_v38 = vsub.f32 %v2635_v20, %v5744_v52  ;;  %v2420_v16 = vmul.f32 %v4541_v61, %v5679_v14 }
 0x768   :  { %4350 = vmatprep.subr.mxu1 %v2631_v7  ;;  %4369 = vmatpush3.msra.mxu0 %v2635_v20  ;;  %v2551_v46 = vsub.f32 %v5741_v4, %v2550_v6  ;;  %v2418_v23 = vmul.f32 %v4543_v2, %v5681_v44  ;;  %v2559_v57 = vsub.f32 %v2440_v55, %v5749_v31 }
 0x769   :  { %4351 = vmatpush3.msra.mxu1 %v2631_v7  ;;  %4398 = vmatprep.subr.mxu0 %v5732_v43  ;;  %v2638_v33 = vand.u32 4294901760, %v2637_v38  ;;  %v2449_v47 = vsel %vm2332_vm15, %v2420_v16, 0 }
 0x76a   :  { %v4545_v40 = vpop.eup %4544  ;;  %v2552_v27 = vand.u32 4294901760, %v2551_v46  ;;  %v2446_v14 = vsel %vm2332_vm15, %v2418_v23, 0  ;;  %v5760_v50 = vand.u32 4294901760, %v2449_v47  ;;  %v2560_v45 = vand.u32 4294901760, %v2559_v57 }
 0x76b   :  { %4352 = vmatprep.subr.mxu1 %v2638_v33  ;;  %v2416_v30 = vmul.f32 %v4545_v40, %v5685_v42  ;;  %v5763_v15 = vand.u32 4294901760, %v2446_v14 }
 0x76c   :  { %4342 = vmatmul.mubr.f32.gmra.mxu0 %v2552_v27  ;;  %4353 = vmatpush3.msra.mxu1 %v2638_v33  ;;  %v2561_v44 = vsub.f32 %v2559_v57, %v2560_v45  ;;  %v2589_v42 = vsub.f32 %v2449_v47, %v5760_v50 }
 0x76d   :  { %4355 = vmatmul.mubr.f32.vlgmr.msra.gmra.mxu1 %v5705_v53  ;;  %4382 = vmatprep.subr.mxu1 %v5716_v48  ;;  %v2443_v63 = vsel %vm2332_vm15, %v2416_v30, 0  ;;  %v2579_v32 = vsub.f32 %v2446_v14, %v5763_v15 }
 0x76e   :  { %4357 = vmatprep.mubr.f32.mxu1 %v5708_v54  ;;  %4383 = vmatpush3.msra.mxu1 %v5716_v48  ;;  %v2568_v35 = vand.u32 4294901760, %v2443_v63  ;;  %v2562_v22 = vand.u32 4294901760, %v2561_v44  ;;  %v2590_v21 = vand.u32 4294901760, %v2589_v42 }
 0x76f   :  { %4384 = vmatprep.subr.mxu1 %v5725_v41  ;;  %v2580_v58 = vand.u32 4294901760, %v2579_v32 }
 0x770   :  { %4385 = vmatpush3.msra.mxu1 %v5725_v41  ;;  %v2569_v39 = vsub.f32 %v2443_v63, %v2568_v35  ;;  %4344 = vmatprep.mubr.f32.mxu0 %v2562_v22  ;;  %v2591_v62 = vsub.f32 %v2589_v42, %v2590_v21 }
 0x771   :  { %4358 = vmatmul.mubr.f32.gmra.mxu1 %v5734_v49  ;;  %4414 = vmatprep.subr.mxu1 %v5716_v48  ;;  %v2581_v59 = vsub.f32 %v2579_v32, %v2580_v58 }
 0x772   :  { %4360 = vmatprep.mubr.f32.mxu1 %v5749_v31  ;;  %v2570_v24 = vand.u32 4294901760, %v2569_v39  ;;  %v2592_v10 = vand.u32 4294901760, %v2591_v62 }
 0x773   :  { %v2582_v1 = vand.u32 4294901760, %v2581_v59 }
 0x774   :  { %v2571_v60 = vsub.f32 %v2569_v39, %v2570_v24 }
 0x775   :  { %4361 = vmatmul.mubr.f32.gmra.mxu1 %v2568_v35 }
 0x776   :  { %4363 = vmatprep.mubr.f32.mxu1 %v5763_v15  ;;  %v2572_v29 = vand.u32 4294901760, %v2571_v60 }
 0x778   :  { %4345 = vmatmul.mubr.f32.gmra.mxu0 %v2572_v29 }
 0x779   :  { %4347 = vmatprep.mubr.f32.mxu0 %v2582_v1  ;;  %4364 = vmatmul.mubr.f32.gmra.mxu1 %v5760_v50 }
 0x77a   :  { %4386 = vmatprep.mubr.f32.mxu1 %v2520_v18  ;;  %v3229_v18 = vld [vmem:[%s5946_s8 + $0x10] sm:$0xff] }
 0x77c   :  { %4348 = vmatmul.mubr.f32.gmra.mxu0 %v2592_v10 }
 0x77d   :  { %4370 = vmatprep.mubr.f32.mxu0 %v5698_v36  ;;  %4387 = vmatmul.mubr.f32.vlgmr.msra.gmra.mxu1 %v2530_v37 }
 0x77e   :  { %4415 = vmatpush3.msra.mxu1 %v5716_v48  ;;  %4389 = vmatprep.mubr.f32.mxu1 %v2540_v25 }
 0x77f   :  { %4416 = vmatprep.subr.mxu1 %v5725_v41 }
 0x780   :  { %4417 = vmatpush3.msra.mxu1 %v5725_v41  ;;  %4371 = vmatmul.mubr.f32.vlgmr.msra.gmra.mxu0 %v5711_v0 }
 0x781   :  { %4399 = vmatpush3.msra.mxu0 %v5732_v43  ;;  %4373 = vmatprep.mubr.f32.mxu0 %v5714_v3  ;;  %v5828_v3 = vand.u32 4294901760, %v3229_v18 }
 0x782   :  { %4390 = vmatmul.mubr.f32.gmra.mxu1 %v2550_v6  ;;  %4400 = vmatprep.subr.mxu0 %v5744_v52 }
 0x783   :  { %4392 = vmatprep.mubr.f32.mxu1 %v2560_v45  ;;  %4401 = vmatpush3.msra.mxu0 %v5744_v52  ;;  %v5840_v25 = vsub.f32 %v3229_v18, %v5828_v3 }
 0x784   :  { %4374 = vmatmul.mubr.f32.gmra.mxu0 %v5741_v4 }
 0x785   :  { %4376 = vmatprep.mubr.f32.mxu0 %v2559_v57  ;;  %v5853_v12 = vand.u32 4294901760, %v5840_v25 }
 0x786   :  { %4393 = vmatmul.mubr.f32.gmra.mxu1 %v2570_v24 }
 0x787   :  { %4395 = vmatprep.mubr.f32.mxu1 %v2580_v58  ;;  %v3368_v43 = vsub.f32 %v5840_v25, %v5853_v12 }
 0x788   :  { %4377 = vmatmul.mubr.f32.gmra.mxu0 %v2569_v39 }
 0x789   :  { %4379 = vmatprep.mubr.f32.mxu0 %v2579_v32  ;;  %v3369_v13 = vand.u32 4294901760, %v3368_v43 }
 0x78a   :  { %4396 = vmatmul.mubr.f32.gmra.mxu1 %v2590_v21 }
 0x78b   :  { %4418 = vmatprep.mubr.f32.mxu1 %v5694_v9 }
 0x78c   :  { %4380 = vmatmul.mubr.f32.gmra.mxu0 %v2589_v42 }
 0x78d   :  { %4402 = vmatprep.mubr.f32.mxu0 %v5694_v9  ;;  %v3230_v9 = vld [vmem:[%s5946_s8 + $0x18] sm:$0xff] }
 0x78e   :  { %4419 = vmatmul.mubr.f32.vlgmr.msra.gmra.mxu1 %v5705_v53  ;;  %v5814_v36 = vand.u32 4294901760, %v3230_v9 }
 0x78f   :  { %4421 = vmatprep.mubr.f32.mxu1 %v5708_v54 }
 0x790   :  { %4403 = vmatmul.mubr.f32.vlgmr.msra.gmra.mxu0 %v5705_v53  ;;  %v3228_v53 = vld [vmem:[%s5946_s8 + $0x8] sm:$0xff]  ;;  %v5826_v0 = vsub.f32 %v3230_v9, %v5814_v36  ;;  %4430 = vmatprep.subr.mxu0 %v5814_v36 }
 0x791   :  { %4405 = vmatprep.mubr.f32.mxu0 %v5708_v54  ;;  %v3227_v54 = vld [vmem:[%s5946_s8] sm:$0xff]  ;;  %v5830_v11 = vand.u32 4294901760, %v3228_v53  ;;  %4431 = vmatpush3.msra.mxu0 %v5814_v36 }
 0x792   :  { %4422 = vmatmul.mubr.f32.gmra.mxu1 %v5734_v49  ;;  %v5832_v48 = vand.u32 4294901760, %v3227_v54  ;;  %v5837_v37 = vand.u32 4294901760, %v5826_v0  ;;  %4432 = vmatprep.subr.mxu0 %v5828_v3 }
 0x793   :  { %4424 = vmatprep.mubr.f32.mxu1 %v5749_v31  ;;  %v5843_v56 = vsub.f32 %v3228_v53, %v5830_v11  ;;  %4433 = vmatpush3.msra.mxu0 %v5828_v3 }
 0x794   :  { %4406 = vmatmul.mubr.f32.gmra.mxu0 %v5734_v49  ;;  %v5846_v8 = vsub.f32 %v3227_v54, %v5832_v48  ;;  %v3361_v28 = vsub.f32 %v5826_v0, %v5837_v37  ;;  %4434 = vmatprep.subr.mxu0 %v5830_v11 }
 0x795   :  { %4408 = vmatprep.mubr.f32.mxu0 %v5749_v31  ;;  %v5856_v41 = vand.u32 4294901760, %v5843_v56  ;;  %4435 = vmatpush3.msra.mxu0 %v5830_v11 }
 0x796   :  { %4425 = vmatmul.mubr.f32.gmra.mxu1 %v2568_v35  ;;  %v5859_v17 = vand.u32 4294901760, %v5846_v8  ;;  %v3362_v51 = vand.u32 4294901760, %v3361_v28  ;;  %4436 = vmatprep.subr.mxu0 %v5832_v48 }
 0x797   :  { %4427 = vmatprep.mubr.f32.mxu1 %v5763_v15  ;;  %v3375_v5 = vsub.f32 %v5843_v56, %v5856_v41  ;;  %4437 = vmatpush3.msra.mxu0 %v5832_v48 }
 0x798   :  { %4409 = vmatmul.mubr.f32.gmra.mxu0 %v2568_v35  ;;  %v3382_v49 = vsub.f32 %v5846_v8, %v5859_v17  ;;  %4441 = vmatprep.subr.mxu1 %v3362_v51 }
 0x799   :  { %4411 = vmatprep.mubr.f32.mxu0 %v5763_v15  ;;  %v3376_v20 = vand.u32 4294901760, %v3375_v5  ;;  %4452 = vmatprep.subr.mxu0 %v5826_v0 }
 0x79a   :  { %4428 = vmatmul.mubr.f32.gmra.mxu1 %v5760_v50  ;;  %v3383_v26 = vand.u32 4294901760, %v3382_v49 }
 0x79b   :  { %4442 = vmatpush3.msra.mxu1 %v3362_v51 }
 0x79c   :  { %4412 = vmatmul.mubr.f32.gmra.mxu0 %v5760_v50  ;;  %4443 = vmatprep.subr.mxu1 %v3369_v13 }
 0x79d   :  { %4444 = vmatpush3.msra.mxu1 %v3369_v13 }
 0x79e   :  { %4445 = vmatprep.subr.mxu1 %v3376_v20 }
 0x79f   :  { %4446 = vmatpush3.msra.mxu1 %v3376_v20 }
 0x7a0   :  { %4447 = vmatprep.subr.mxu1 %v3383_v26 }
 0x7a1   :  { %4448 = vmatpush3.msra.mxu1 %v3383_v26 }
 0x7a2   :  { %4463 = vmatprep.subr.mxu1 %v5814_v36 }
 0x825   :  { %v4340_v34 = vpop.f32.mrf.mxu0 }
 0x827   :  { %v2524_v52 = vpop.f32.mrf.mxu0 }
 0x82c   :  { %v4343_v7 = vpop.f32.mrf.mxu0 }
 0x82d   :  { %v4356_v4 = vpop.f32.mrf.mxu1 }
 0x82e   :  { %v2544_v2 = vpop.f32.mrf.mxu0  ;;  %v2682_v35 = vadd.f32 %v4356_v4, %v4340_v34 }
 0x82f   :  { %v2675_v19 = vpop.f32.mrf.mxu1 }
 0x830   :  { %v2676_v58 = vadd.f32 %v2675_v19, %v2524_v52 }
 0x831   :  { %v4359_v61 = vpop.f32.mrf.mxu1 }
 0x832   :  { %v2694_v59 = vadd.f32 %v4359_v61, %v4343_v7 }
 0x833   :  { %v2687_v6 = vpop.f32.mrf.mxu1 }
 0x834   :  { %v2688_v29 = vadd.f32 %v2687_v6, %v2544_v2 }
 0x835   :  { %v4362_v55 = vpop.f32.mrf.mxu1 }
 0x837   :  { %v2699_v38 = vpop.f32.mrf.mxu1 }
 0x838   :  { %v4346_v31 = vpop.f32.mrf.mxu0 }
 0x839   :  { %v4365_v16 = vpop.f32.mrf.mxu1  ;;  %v2706_v28 = vadd.f32 %v4362_v55, %v4346_v31  ;;  %v4546_v31 = vld [vmem:[%s5943_s5 + $0x80] sm:$0xff] }
 0x83a   :  { %v2564_v46 = vpop.f32.mrf.mxu0 }
 0x83b   :  { %v2711_v23 = vpop.f32.mrf.mxu1  ;;  %v2700_v13 = vadd.f32 %v2699_v38, %v2564_v46 }
 0x83c   :  { %v4349_v33 = vpop.f32.mrf.mxu0 }
 0x83d   :  { %v4388_v57 = vpop.f32.mrf.mxu1  ;;  %v2718_v4 = vadd.f32 %v4365_v16, %v4349_v33 }
 0x83e   :  { %v2584_v47 = vpop.f32.mrf.mxu0 }
 0x83f   :  { %v2917_v40 = vpop.f32.mrf.mxu1 }
 0x840   :  { %v4372_v27 = vpop.f32.mrf.mxu0 }
 0x841   :  { %v2801_v39 = vadd.f32 %v4372_v27, %v2682_v35  ;;  %v2712_v27 = vadd.f32 %v2711_v23, %v2584_v47 }
 0x842   :  { %v4391_v14 = vpop.f32.mrf.mxu1  ;;  %v2793_v50 = vpop.f32.mrf.mxu0 }
 0x843   :  { %v2794_v60 = vadd.f32 %v2793_v50, %v2676_v58  ;;  %v2926_v9 = vadd.f32 %v4388_v57, %v2801_v39  ;;  %v4548_v39 = vld [vmem:[%s5943_s5 + $0x90] sm:$0xff] }
 0x844   :  { %v2933_v45 = vpop.f32.mrf.mxu1  ;;  %v4375_v30 = vpop.f32.mrf.mxu0 }
 0x845   :  { %v2815_v10 = vadd.f32 %v4375_v30, %v2694_v59  ;;  %v2918_v43 = vadd.f32 %v2917_v40, %v2794_v60  ;;  %v4549_v60 = vld [vmem:[%s5943_s5 + $0x98] sm:$0xff] }
 0x846   :  { %v4394_v15 = vpop.f32.mrf.mxu1  ;;  %v2807_v44 = vpop.f32.mrf.mxu0 }
 0x847   :  { %v2808_v18 = vadd.f32 %v2807_v44, %v2688_v29  ;;  %v2942_v34 = vadd.f32 %v4391_v14, %v2815_v10 }
 0x848   :  { %v2949_v63 = vpop.f32.mrf.mxu1  ;;  %v4378_v32 = vpop.f32.mrf.mxu0 }
 0x849   :  { %v2829_v20 = vadd.f32 %v4378_v32, %v2706_v28  ;;  %v2934_v61 = vadd.f32 %v2933_v45, %v2808_v18  ;;  %v4547_v45 = vld [vmem:[%s5943_s5 + $0x88] sm:$0xff] }
 0x84a   :  { %v4397_v42 = vpop.f32.mrf.mxu1  ;;  %v2821_v22 = vpop.f32.mrf.mxu0 }
 0x84b   :  { %v2822_v7 = vadd.f32 %v2821_v22, %v2700_v13  ;;  %v2958_v40 = vadd.f32 %v4394_v15, %v2829_v20 }
 0x84c   :  { %v2965_v24 = vpop.f32.mrf.mxu1  ;;  %v4381_v21 = vpop.f32.mrf.mxu0 }
 0x84d   :  { %v2843_v55 = vadd.f32 %v4381_v21, %v2718_v4  ;;  %v2950_v35 = vadd.f32 %v2949_v63, %v2822_v7  ;;  %v4553_v7 = vld [vmem:[%s5943_s5 + $0xb8] sm:$0xff] }
 0x84e   :  { %v4420_v62 = vpop.f32.mrf.mxu1  ;;  %v2835_v1 = vpop.f32.mrf.mxu0 }
 0x84f   :  { %v2836_v14 = vadd.f32 %v2835_v1, %v2712_v27  ;;  %v2974_v59 = vadd.f32 %v4397_v42, %v2843_v55 }
 0x850   :  { %v3165_v53 = vpop.f32.mrf.mxu1  ;;  %v4404_v54 = vpop.f32.mrf.mxu0 }
 0x851   :  { %v3057_v51 = vadd.f32 %v4404_v54, %v2926_v9  ;;  %v2966_v10 = vadd.f32 %v2965_v24, %v2836_v14 }
 0x852   :  { %v4423_v5 = vpop.f32.mrf.mxu1  ;;  %v3050_v49 = vpop.f32.mrf.mxu0 }
 0x853   :  { %v3051_v26 = vadd.f32 %v3050_v49, %v2918_v43  ;;  %v3172_v6 = vadd.f32 %v4420_v62, %v3057_v51  ;;  %v4550_v51 = vld [vmem:[%s5943_s5 + $0xa0] sm:$0xff]  ;;  %v4551_v49 = vld [vmem:[%s5943_s5 + $0xa8] sm:$0xff] }
 0x854   :  { %v3177_v19 = vpop.f32.mrf.mxu1  ;;  %v4407_v52 = vpop.f32.mrf.mxu0 }
 0x855   :  { %v3166_v2 = vadd.f32 %v3165_v53, %v3051_v26  ;;  %v3069_v57 = vadd.f32 %v4407_v52, %v2942_v34  ;;  %v3212_v32 = vmul.f32 %v4547_v45, %v3172_v6 }
 0x856   :  { %v4426_v50 = vpop.f32.mrf.mxu1  ;;  %v3062_v30 = vpop.f32.mrf.mxu0 }
 0x857   :  { %v3211_v38 = vmul.f32 %v4546_v31, %v3166_v2  ;;  %v3063_v46 = vadd.f32 %v3062_v30, %v2934_v61  ;;  %v3184_v16 = vadd.f32 %v4423_v5, %v3069_v57 }
 0x858   :  { %v3189_v33 = vpop.f32.mrf.mxu1  ;;  %v4410_v44 = vpop.f32.mrf.mxu0 }
 0x859   :  { %v3178_v23 = vadd.f32 %v3177_v19, %v3063_v46  ;;  %v3081_v47 = vadd.f32 %v4410_v44, %v2958_v40  ;;  %v3220_v58 = vadd.f32 %v3212_v32, %v3211_v38  ;;  %v3214_v29 = vmul.f32 %v4549_v60, %v3184_v16  ;;  %v4552_v19 = vld [vmem:[%s5943_s5 + $0xb0] sm:$0xff] }
 0x85a   :  { %v3074_v22 = vpop.f32.mrf.mxu0  ;;  %v4429_v62 = vpop.f32.mrf.mxu1 }
 0x85b   :  { %v3213_v21 = vmul.f32 %v4548_v39, %v3178_v23  ;;  %v3075_v15 = vadd.f32 %v3074_v22, %v2950_v35  ;;  %v3196_v18 = vadd.f32 %v4426_v50, %v3081_v47 }
 0x85c   :  { %v4413_v1 = vpop.f32.mrf.mxu0  ;;  %v3201_v5 = vpop.f32.mrf.mxu1 }
 0x85d   :  { %v3221_v9 = vadd.f32 %v3220_v58, %v3213_v21  ;;  %v3190_v63 = vadd.f32 %v3189_v33, %v3075_v15  ;;  %v3093_v53 = vadd.f32 %v4413_v1, %v2974_v59  ;;  %v3216_v13 = vmul.f32 %v4551_v49, %v3196_v18 }
 0x85e   :  { %v3086_v54 = vpop.f32.mrf.mxu0 }
 0x85f   :  { %v3222_v28 = vadd.f32 %v3221_v9, %v3214_v29  ;;  %v3215_v43 = vmul.f32 %v4550_v51, %v3190_v63  ;;  %v3087_v42 = vadd.f32 %v3086_v54, %v2966_v10  ;;  %v3208_v20 = vadd.f32 %v4429_v62, %v3093_v53 }
 0x861   :  { %v3202_v24 = vadd.f32 %v3201_v5, %v3087_v42  ;;  %v3239_v26 = vsel %vm38_vm0, %v3222_v28, 0  ;;  %v3224_v4 = vadd.f32 %v3216_v13, %v3215_v43  ;;  %v3218_v6 = vmul.f32 %v4553_v7, %v3208_v20 }
 0x862   :  { %v3313_v34 = vand.u32 4294901760, %v3239_v26 }
 0x863   :  { %v3217_v52 = vmul.f32 %v4552_v19, %v3202_v24 }
 0x864   :  { %4449 = vmatprep.mubr.f32.mxu1 %v3313_v34  ;;  %v3314_v61 = vsub.f32 %v3239_v26, %v3313_v34 }
 0x865   :  { %v3225_v2 = vadd.f32 %v3224_v4, %v3217_v52 }
 0x866   :  { %v3315_v57 = vand.u32 4294901760, %v3314_v61 }
 0x867   :  { %v3226_v27 = vadd.f32 %v3225_v2, %v3218_v6 }
 0x868   :  { %v3316_v50 = vsub.f32 %v3314_v61, %v3315_v57 }
 0x869   :  { %v3242_v30 = vsel %vm38_vm0, %v3226_v27, 0 }
 0x86a   :  { %v3323_v55 = vand.u32 4294901760, %v3242_v30  ;;  %v3317_v31 = vand.u32 4294901760, %v3316_v50 }
 0x86c   :  { %v3324_v38 = vsub.f32 %v3242_v30, %v3323_v55  ;;  %4438 = vmatprep.mubr.f32.mxu0 %v3317_v31  ;;  %4450 = vmatmul.mubr.f32.vlgmr.msra.gmra.mxu1 %v3323_v55 }
 0x86d   :  { %4464 = vmatpush3.msra.mxu1 %v5814_v36  ;;  %4471 = vmatprep.mubr.f32.mxu1 %v3315_v57 }
 0x86e   :  { %4465 = vmatprep.subr.mxu1 %v5828_v3  ;;  %v3325_v46 = vand.u32 4294901760, %v3324_v38 }
 0x86f   :  { %4466 = vmatpush3.msra.mxu1 %v5828_v3 }
 0x870   :  { %4467 = vmatprep.subr.mxu1 %v5830_v11  ;;  %v3326_v40 = vsub.f32 %v3324_v38, %v3325_v46 }
 0x871   :  { %4468 = vmatpush3.msra.mxu1 %v5830_v11 }
 0x872   :  { %4469 = vmatprep.subr.mxu1 %v5832_v48  ;;  %v3327_v14 = vand.u32 4294901760, %v3326_v40 }
 0x873   :  { %4470 = vmatpush3.msra.mxu1 %v5832_v48 }
 0x874   :  { %4472 = vmatmul.mubr.f32.vlgmr.msra.gmra.mxu1 %v3325_v46  ;;  %4485 = vmatprep.subr.mxu1 %v5814_v36 }
 0x875   :  { %4439 = vmatmul.mubr.f32.vlgmr.msra.gmra.mxu0 %v3327_v14  ;;  %4486 = vmatpush3.msra.mxu1 %v5814_v36 }
 0x876   :  { %4453 = vmatpush3.msra.mxu0 %v5826_v0  ;;  %4493 = vmatprep.mubr.f32.mxu1 %v3313_v34  ;;  %v3841_v0 = vld [vmem:[%s5947_s9] ss:$0 sm:$0xff]  ;;  %s4588_s9 = smov [#allocation2]  }
 0x877   :  { %4454 = vmatprep.subr.mxu0 %v5840_v25  ;;  %4460 = vmatprep.mubr.f32.mxu0 %v3314_v61  ;;  %s3779_s13 = sshll.u32 %s4588_s9, 4  ;;  %s3780_s13 = int_to_ptr.vmem [resolvable:$true] %s3779_s13 }
 0x878   :  { %4487 = vmatprep.subr.mxu1 %v5828_v3  ;;  %4455 = vmatpush3.msra.mxu0 %v5840_v25  ;;  %s4554_s7 = scalar_lea.vmem %s3780_s13, 256  ;;  %p4559_p1 = scmp.lt.s32.totalorder %s3780_s13, %s3780_s13 }
 0x879   :  { %4488 = vmatpush3.msra.mxu1 %v5828_v3  ;;  %4456 = vmatprep.subr.mxu0 %v5843_v56  ;;  %p4555_p0 = scmp.ne.s32.totalorder %s3780_s13, %s4554_s7  ;;  %p4560_p2 = scmp.lt.s32.totalorder %s4554_s7, %s4554_s7 }
 0x87a   :  { %4489 = vmatprep.subr.mxu1 %v5830_v11  ;;  %4457 = vmatpush3.msra.mxu0 %v5843_v56 }
 0x87b   :  { %4490 = vmatpush3.msra.mxu1 %v5830_v11  ;;  %4458 = vmatprep.subr.mxu0 %v5846_v8  ;;  %p4561_p3 = por %p4560_p2, %p4559_p1 }
 0x87c   :  { %4491 = vmatprep.subr.mxu1 %v5832_v48  ;;  %4459 = vmatpush3.msra.mxu0 %v5846_v8 }
 0x87d   :  { %4492 = vmatpush3.msra.mxu1 %v5832_v48  ;;  %4461 = vmatmul.mubr.f32.vlgmr.msra.gmra.mxu0 %v3324_v38  ;;  %p4562_p4 = pnand %p4561_p3, %p4555_p0 }
 0x87e   :  { %4474 = vmatprep.subr.mxu0 %v5837_v37  ;;  %4494 = vmatmul.mubr.f32.vlgmr.msra.gmra.mxu1 %v3323_v55 }
 0x87f   :  { %4475 = vmatpush3.msra.mxu0 %v5837_v37  ;;  %4482 = vmatprep.mubr.f32.mxu0 %v3313_v34 }
 0x880   :  { %4476 = vmatprep.subr.mxu0 %v5853_v12 }
 0x881   :  { %4477 = vmatpush3.msra.mxu0 %v5853_v12 }
 0x882   :  { %4478 = vmatprep.subr.mxu0 %v5856_v41 }
 0x883   :  { %4479 = vmatpush3.msra.mxu0 %v5856_v41 }
 0x884   :  { %4480 = vmatprep.subr.mxu0 %v5859_v17 }
 0x885   :  { %4481 = vmatpush3.msra.mxu0 %v5859_v17 }
 0x886   :  { %4483 = vmatmul.mubr.f32.vlgmr.msra.gmra.mxu0 %v3323_v55 }
 0x92c   :  { %v4451_v3 = vpop.f32.mrf.mxu1 }
 0x92e   :  { %v3420_v56 = vpop.f32.mrf.mxu1 }
 0x934   :  { %v4473_v12 = vpop.f32.mrf.mxu1 }
 0x935   :  { %v4440_v36 = vpop.f32.mrf.mxu0 }
 0x936   :  { %v3330_v48 = vadd.f32 %v4440_v36, %v3841_v0  ;;  %v3590_v45 = vpop.f32.mrf.mxu1 }
 0x937   :  { %v3319_v11 = vpop.f32.mrf.mxu0 }
 0x938   :  { %v3320_v37 = vadd.f32 %v3841_v0, %v3319_v11  ;;  %v3427_v8 = vadd.f32 %v4451_v3, %v3330_v48 }
 0x93a   :  { %v3421_v33 = vadd.f32 %v3420_v56, %v3320_v37 }
 0x93d   :  { %v4462_v25 = vpop.f32.mrf.mxu0 }
 0x93e   :  { %v3514_v41 = vadd.f32 %v4462_v25, %v3427_v8  ;;  %v4495_v32 = vpop.f32.mrf.mxu1 }
 0x93f   :  { %v3506_v16 = vpop.f32.mrf.mxu0 }
 0x940   :  { %v3507_v44 = vadd.f32 %v3506_v16, %v3421_v33  ;;  %v3599_v17 = vadd.f32 %v4473_v12, %v3514_v41  ;;  %v3762_v21 = vpop.f32.mrf.mxu1 }
 0x942   :  { %v3591_v35 = vadd.f32 %v3590_v45, %v3507_v44 }
 0x946   :  { %v4484_v23 = vpop.f32.mrf.mxu0 }
 0x947   :  { %v3688_v47 = vadd.f32 %v4484_v23, %v3599_v17 }
 0x948   :  { %v3681_v22 = vpop.f32.mrf.mxu0 }
 0x949   :  { %v3769_v58 = vadd.f32 %v4495_v32, %v3688_v47  ;;  %v3682_v39 = vadd.f32 %v3681_v22, %v3591_v35 }
 0x94b   :  { %3773 = vst.msk [vmem:[#allocation2 + $0x8] sm:$0xff] %vm38_vm0, %v3769_v58  ;;  %v3763_v15 = vadd.f32 %v3762_v21, %v3682_v39 }
 0x94d   :  { %3772 = vst.msk [vmem:[#allocation2] sm:$0xff] %vm38_vm0, %v3763_v15 }
 0x94e   :  { %4565 = shalt.err (!%p4562_p4)
}
 0x94f   :  { %s4589_s14 = smov 128  }
 0x950   :  { %3785 = dma.vmem_to_hbm [thread:$0]  %s3780_s13, 256, %s5948_s10, [#allocation3], %s4589_s14, %s4589_s14, %s4586_s12  }
 0x951   :  { %4574 = dma.done.wait [#allocation3], 256  }
 0x952   :  { %4575 = vsyncadd [#allocation3], 4294967040 }
 0x953   :  { %3789 = vsyncpa [#allocation3], 1 }

</bundles_post_ra>
